<compile_context>
chip_gen: v6e
topology: v6e:2x2x1
jax: 0.10.0
libtpu: 0.0.40
codegen_flags: <defaults>
</compile_context>

<pallas_src>
import functools
import math

import jax
import jax.numpy as jnp
from jax import lax
from jax.experimental import pallas as pl
from jax.experimental.pallas import tpu as pltpu

BETA = 0.5
ALPHA = 0.9


def _ccc_kernel(yt_ref, yp_ref, out_ref, *, alpha, beta, bblk, feat):
    T = yt_ref.shape[0]
    BD = yt_ref.shape[1]          # bblk * feat
    D = feat
    f32 = jnp.float32

    # --- lower-triangular smoothing matrix, generated in-registers ----------
    # W[t, 0]    = (1 - alpha)^t
    # W[t, k>=1] = alpha * (1 - alpha)^(t - k)   for 1 <= k <= t
    t = lax.broadcasted_iota(jnp.int32, (T, T), 0)
    k = lax.broadcasted_iota(jnp.int32, (T, T), 1)
    diff = jnp.maximum(t - k, 0).astype(f32)
    decay = jnp.exp(diff * math.log(1.0 - alpha))        # (1-alpha)^(t-k), EUP
    w = jnp.where(k == 0, decay, alpha * decay)
    w = jnp.where(k <= t, w, jnp.zeros_like(w))

    yt = yt_ref[...]                    # (T, Bblk*D), input dtype (bf16 stays bf16)
    yp = yp_ref[...]
    wc = w.astype(yt.dtype)             # MXU operands in input dtype, f32 accum

    # --- exponential smoothing of Bblk sequences as one wide matmul each ----
    ts = jnp.dot(wc, yt, preferred_element_type=f32)     # (T, Bblk*D) f32
    ps = jnp.dot(wc, yp, preferred_element_type=f32)

    # --- fused single-pass (un-centered) moments; reduce the time axis ------
    r_t = jnp.sum(ts, axis=0, keepdims=True)             # (1, Bblk*D)
    r_p = jnp.sum(ps, axis=0, keepdims=True)
    r_tt = jnp.sum(ts * ts, axis=0, keepdims=True)
    r_pp = jnp.sum(ps * ps, axis=0, keepdims=True)
    r_tp = jnp.sum(ts * ps, axis=0, keepdims=True)

    # --- per-sequence segment sums over lanes via a tiny 0/1 matmul ---------
    lane = lax.broadcasted_iota(jnp.int32, (BD, bblk), 0)
    seg = lax.broadcasted_iota(jnp.int32, (BD, bblk), 1)
    g = ((lane >= seg * D) & (lane < (seg + 1) * D)).astype(f32)  # (Bblk*D, Bblk)

    s_t = jnp.dot(r_t, g, preferred_element_type=f32)     # (1, Bblk)
    s_p = jnp.dot(r_p, g, preferred_element_type=f32)
    s_tt = jnp.dot(r_tt, g, preferred_element_type=f32)
    s_pp = jnp.dot(r_pp, g, preferred_element_type=f32)
    s_tp = jnp.dot(r_tp, g, preferred_element_type=f32)

    n = float(T * D)
    mean_t = s_t / n
    mean_p = s_p / n
    ss_tt = s_tt - s_t * mean_t
    ss_pp = s_pp - s_p * mean_p
    ss_tp = s_tp - s_t * mean_p
    var_t = ss_tt / (n - 1.0)          # torch.var / torch.std: unbiased (ddof=1)
    var_p = ss_pp / (n - 1.0)
    cov = ss_tp / n                    # torch.mean((x-mx)*(y-my)): biased

    # numerator = 2*cor*sd_t*sd_p == 2*cov (sqrt-free); degenerate constant
    # inputs give NaN, exactly like the PyTorch reference.
    ccc = 2.0 * cov / (var_t + var_p + (mean_t - mean_p) ** 2)
    out_ref[...] = ((1.0 - ccc) * beta).astype(out_ref.dtype)      # (1, Bblk)


def exponential_smoothed_ccc_loss_batched(y_true, y_pred, *, alpha=ALPHA,
                                          beta=BETA, seq_block=8):
    """y_true, y_pred: (B, T, D). Returns (B,) per-sequence losses."""
    assert y_true.shape == y_pred.shape and y_true.ndim == 3
    B, T, D = y_true.shape

    bblk = max(1, min(seq_block, B))
    num_blocks = pl.cdiv(B, bblk)
    if num_blocks > 1 and num_blocks % 2 != 0:
        num_blocks += 1                # even grid -> both TensorCores busy on v7x
    b_pad = num_blocks * bblk

    def prep(y):
        if b_pad != B:
            y = jnp.pad(y, ((0, b_pad - B), (0, 0), (0, 0)))
        # (B, T, D) -> (T, B*D): time on sublanes, sequences*features on lanes.
        return jnp.transpose(y, (1, 0, 2)).reshape(T, b_pad * D)

    yt2 = prep(y_true)
    yp2 = prep(y_pred)

    itemsize = jnp.dtype(y_true.dtype).itemsize
    cost = pl.CostEstimate(
        flops=int(4 * T * T * b_pad * D + 10 * b_pad * D + 8 * T * b_pad * D),
        transcendentals=int(num_blocks * T * T),
        bytes_accessed=int(2 * b_pad * T * D * itemsize + b_pad * 4),
    )

    losses = pl.pallas_call(
        functools.partial(_ccc_kernel, alpha=alpha, beta=beta, bblk=bblk, feat=D),
        out_shape=jax.ShapeDtypeStruct((num_blocks, 1, bblk), jnp.float32),
        grid=(num_blocks,),
        in_specs=[
            pl.BlockSpec((T, bblk * D), lambda i: (0, i)),   # y_true slab
            pl.BlockSpec((T, bblk * D), lambda i: (0, i)),   # y_pred slab
        ],
        out_specs=pl.BlockSpec((None, 1, bblk), lambda i: (i, 0, 0)),
        compiler_params=pltpu.CompilerParams(
            dimension_semantics=("parallel",)),
        cost_estimate=cost,
    )(yt2, yp2)
    return losses.reshape(b_pad)[:B]


def exponential_smoothed_ccc_loss(y_true, y_pred, *, alpha=ALPHA, beta=BETA):
    """Single sequence (T, D) -> scalar loss (matches the PyTorch module)."""
    assert y_true.shape == y_pred.shape and y_true.ndim == 2
    return exponential_smoothed_ccc_loss_batched(
        y_true[None], y_pred[None], alpha=alpha, beta=beta, seq_block=1)[0]


def _reference_loss(y_true, y_pred, beta=BETA, alpha=ALPHA):
    """Pure-JAX reference mirroring the PyTorch module exactly."""
    def smooth(x):
        def step(prev, xt):
            cur = alpha * xt + (1.0 - alpha) * prev
            return cur, cur
        _, rest = jax.lax.scan(step, x[0], x[1:])
        return jnp.concatenate([x[:1], rest], axis=0)

    ts = smooth(y_true)
    ps = smooth(y_pred)
    mt, mp = jnp.mean(ts), jnp.mean(ps)
    var_t = jnp.var(ts, ddof=1)
    var_p = jnp.var(ps, ddof=1)
    sd_t, sd_p = jnp.sqrt(var_t), jnp.sqrt(var_p)
    cor = jnp.mean((ts - mt) * (ps - mp)) / (sd_t * sd_p)
    ccc = (2.0 * cor * sd_t * sd_p) / (var_t + var_p + (mt - mp) ** 2)
    return (1.0 - ccc) * beta


if __name__ == "__main__":
    B, T, D = 8, 8, 128   # small demo: seq=8, lane-aligned feature width 128
    key = jax.random.PRNGKey(0)
    k1, k2 = jax.random.split(key)
    y_true = jax.random.normal(k1, (B, T, D), dtype=jnp.float32)
    # correlated prediction so CCC is non-trivial
    y_pred = 0.8 * y_true + 0.2 * jax.random.normal(k2, (B, T, D), dtype=jnp.float32)

    losses = exponential_smoothed_ccc_loss_batched(y_true, y_pred, seq_block=4)
    jax.block_until_ready(losses)

    ref = jax.vmap(_reference_loss)(y_true, y_pred)
    assert jnp.allclose(losses, ref, atol=1e-4, rtol=1e-4), (losses, ref)

    # single-sequence API (exact forward of the PyTorch module)
    single = exponential_smoothed_ccc_loss(y_true[0], y_pred[0])
    jax.block_until_ready(single)
    assert jnp.allclose(single, ref[0], atol=1e-4, rtol=1e-4), (single, ref[0])

    print("KERNEL_OK")
</pallas_src>

<mosaic_0001>
module attributes {stable_mosaic.version = 11 : i64} {
  func.func @_ccc_kernel(%arg0: i32, %arg1: memref<8x512xf32, #tpu.memory_space<vmem>>, %arg2: memref<8x512xf32, #tpu.memory_space<vmem>>, %arg3: memref<1x1x4xf32, #tpu.memory_space<vmem>>) attributes {dimension_semantics = [#tpu.dimension_semantics<parallel>], iteration_bounds = array<i64: 2>, scalar_prefetch = 0 : i64, scratch_operands = 0 : i64, tpu.core_type = #tpu.core_type<tc>, window_params = [{transform_indices = @transform_0, window_bounds = array<i64: 8, 512>}, {transform_indices = @transform_1, window_bounds = array<i64: 8, 512>}, {transform_indices = @transform_2, window_bounds = array<i64: 1, 1, 4>}]} {
    %0 = tpu.iota {dimensions = array<i32: 0>} : vector<8x8xi32>
    %1 = tpu.iota {dimensions = array<i32: 1>} : vector<8x8xi32>
    %2 = arith.subi %0, %1 : vector<8x8xi32>
    %c0_i32 = arith.constant 0 : i32
    %3 = vector.broadcast %c0_i32 : i32 to vector<8x8xi32>
    %4 = arith.maxsi %2, %3 : vector<8x8xi32>
    %5 = arith.sitofp %4 : vector<8x8xi32> to vector<8x8xf32>
    %cst = arith.constant -2.30258512 : f32
    %6 = vector.broadcast %cst : f32 to vector<8x8xf32>
    %7 = arith.mulf %5, %6 : vector<8x8xf32>
    %8 = math.exp %7 : vector<8x8xf32>
    %c0_i32_0 = arith.constant 0 : i32
    %9 = vector.broadcast %c0_i32_0 : i32 to vector<8x8xi32>
    %10 = arith.cmpi eq, %1, %9 : vector<8x8xi32>
    %cst_1 = arith.constant 0.899999976 : f32
    %11 = vector.broadcast %cst_1 : f32 to vector<8x8xf32>
    %12 = arith.mulf %11, %8 : vector<8x8xf32>
    %13 = arith.select %10, %8, %12 : vector<8x8xi1>, vector<8x8xf32>
    %14 = arith.cmpi sle, %1, %0 : vector<8x8xi32>
    %cst_2 = arith.constant 0.000000e+00 : f32
    %15 = vector.broadcast %cst_2 : f32 to vector<8x8xf32>
    %16 = arith.select %14, %13, %15 : vector<8x8xi1>, vector<8x8xf32>
    %c0 = arith.constant 0 : index
    %c0_3 = arith.constant 0 : index
    %17 = vector.load %arg1[%c0, %c0_3] : memref<8x512xf32, #tpu.memory_space<vmem>>, vector<8x512xf32>
    %c0_4 = arith.constant 0 : index
    %c0_5 = arith.constant 0 : index
    %18 = vector.load %arg2[%c0_4, %c0_5] : memref<8x512xf32, #tpu.memory_space<vmem>>, vector<8x512xf32>
    %cst_6 = arith.constant dense<0.000000e+00> : vector<8x512xf32>
    %19 = tpu.matmul %16, %17, %cst_6 {dimension_numbers = #tpu.dot_dimension_numbers<[1], [0], [0], [1], [0, 0, 1, 1], [], []>} : vector<8x8xf32>, vector<8x512xf32>, vector<8x512xf32> -> vector<8x512xf32>
    %cst_7 = arith.constant dense<0.000000e+00> : vector<8x512xf32>
    %20 = tpu.matmul %16, %18, %cst_7 {dimension_numbers = #tpu.dot_dimension_numbers<[1], [0], [0], [1], [0, 0, 1, 1], [], []>} : vector<8x8xf32>, vector<8x512xf32>, vector<8x512xf32> -> vector<8x512xf32>
    %cst_8 = arith.constant dense<0.000000e+00> : vector<512xf32>
    %21 = vector.multi_reduction <add>, %19, %cst_8 [0] : vector<8x512xf32> to vector<512xf32>
    %22 = vector.shape_cast %21 : vector<512xf32> to vector<1x512xf32>
    %cst_9 = arith.constant dense<0.000000e+00> : vector<512xf32>
    %23 = vector.multi_reduction <add>, %20, %cst_9 [0] : vector<8x512xf32> to vector<512xf32>
    %24 = vector.shape_cast %23 : vector<512xf32> to vector<1x512xf32>
    %25 = arith.mulf %19, %19 : vector<8x512xf32>
    %cst_10 = arith.constant dense<0.000000e+00> : vector<512xf32>
    %26 = vector.multi_reduction <add>, %25, %cst_10 [0] : vector<8x512xf32> to vector<512xf32>
    %27 = vector.shape_cast %26 : vector<512xf32> to vector<1x512xf32>
    %28 = arith.mulf %20, %20 : vector<8x512xf32>
    %cst_11 = arith.constant dense<0.000000e+00> : vector<512xf32>
    %29 = vector.multi_reduction <add>, %28, %cst_11 [0] : vector<8x512xf32> to vector<512xf32>
    %30 = vector.shape_cast %29 : vector<512xf32> to vector<1x512xf32>
    %31 = arith.mulf %19, %20 : vector<8x512xf32>
    %cst_12 = arith.constant dense<0.000000e+00> : vector<512xf32>
    %32 = vector.multi_reduction <add>, %31, %cst_12 [0] : vector<8x512xf32> to vector<512xf32>
    %33 = vector.shape_cast %32 : vector<512xf32> to vector<1x512xf32>
    %34 = tpu.iota {dimensions = array<i32: 0>} : vector<512x4xi32>
    %35 = tpu.iota {dimensions = array<i32: 1>} : vector<512x4xi32>
    %c128_i32 = arith.constant 128 : i32
    %36 = vector.broadcast %c128_i32 : i32 to vector<512x4xi32>
    %37 = arith.muli %35, %36 : vector<512x4xi32>
    %38 = arith.cmpi sge, %34, %37 : vector<512x4xi32>
    %c1_i32 = arith.constant 1 : i32
    %39 = vector.broadcast %c1_i32 : i32 to vector<512x4xi32>
    %40 = arith.addi %35, %39 : vector<512x4xi32>
    %c128_i32_13 = arith.constant 128 : i32
    %41 = vector.broadcast %c128_i32_13 : i32 to vector<512x4xi32>
    %42 = arith.muli %40, %41 : vector<512x4xi32>
    %43 = arith.cmpi slt, %34, %42 : vector<512x4xi32>
    %44 = arith.andi %38, %43 : vector<512x4xi1>
    %45 = arith.extui %44 : vector<512x4xi1> to vector<512x4xi32>
    %46 = arith.sitofp %45 : vector<512x4xi32> to vector<512x4xf32>
    %cst_14 = arith.constant dense<0.000000e+00> : vector<1x4xf32>
    %47 = tpu.matmul %22, %46, %cst_14 {dimension_numbers = #tpu.dot_dimension_numbers<[1], [0], [0], [1], [0, 0, 1, 1], [], []>} : vector<1x512xf32>, vector<512x4xf32>, vector<1x4xf32> -> vector<1x4xf32>
    %cst_15 = arith.constant dense<0.000000e+00> : vector<1x4xf32>
    %48 = tpu.matmul %24, %46, %cst_15 {dimension_numbers = #tpu.dot_dimension_numbers<[1], [0], [0], [1], [0, 0, 1, 1], [], []>} : vector<1x512xf32>, vector<512x4xf32>, vector<1x4xf32> -> vector<1x4xf32>
    %cst_16 = arith.constant dense<0.000000e+00> : vector<1x4xf32>
    %49 = tpu.matmul %27, %46, %cst_16 {dimension_numbers = #tpu.dot_dimension_numbers<[1], [0], [0], [1], [0, 0, 1, 1], [], []>} : vector<1x512xf32>, vector<512x4xf32>, vector<1x4xf32> -> vector<1x4xf32>
    %cst_17 = arith.constant dense<0.000000e+00> : vector<1x4xf32>
    %50 = tpu.matmul %30, %46, %cst_17 {dimension_numbers = #tpu.dot_dimension_numbers<[1], [0], [0], [1], [0, 0, 1, 1], [], []>} : vector<1x512xf32>, vector<512x4xf32>, vector<1x4xf32> -> vector<1x4xf32>
    %cst_18 = arith.constant dense<0.000000e+00> : vector<1x4xf32>
    %51 = tpu.matmul %33, %46, %cst_18 {dimension_numbers = #tpu.dot_dimension_numbers<[1], [0], [0], [1], [0, 0, 1, 1], [], []>} : vector<1x512xf32>, vector<512x4xf32>, vector<1x4xf32> -> vector<1x4xf32>
    %cst_19 = arith.constant 1.024000e+03 : f32
    %52 = vector.broadcast %cst_19 : f32 to vector<1x4xf32>
    %53 = arith.divf %47, %52 : vector<1x4xf32>
    %cst_20 = arith.constant 1.024000e+03 : f32
    %54 = vector.broadcast %cst_20 : f32 to vector<1x4xf32>
    %55 = arith.divf %48, %54 : vector<1x4xf32>
    %56 = arith.mulf %47, %53 : vector<1x4xf32>
    %57 = arith.subf %49, %56 : vector<1x4xf32>
    %58 = arith.mulf %48, %55 : vector<1x4xf32>
    %59 = arith.subf %50, %58 : vector<1x4xf32>
    %60 = arith.mulf %47, %55 : vector<1x4xf32>
    %61 = arith.subf %51, %60 : vector<1x4xf32>
    %cst_21 = arith.constant 1.023000e+03 : f32
    %62 = vector.broadcast %cst_21 : f32 to vector<1x4xf32>
    %63 = arith.divf %57, %62 : vector<1x4xf32>
    %cst_22 = arith.constant 1.023000e+03 : f32
    %64 = vector.broadcast %cst_22 : f32 to vector<1x4xf32>
    %65 = arith.divf %59, %64 : vector<1x4xf32>
    %cst_23 = arith.constant 1.024000e+03 : f32
    %66 = vector.broadcast %cst_23 : f32 to vector<1x4xf32>
    %67 = arith.divf %61, %66 : vector<1x4xf32>
    %cst_24 = arith.constant 2.000000e+00 : f32
    %68 = vector.broadcast %cst_24 : f32 to vector<1x4xf32>
    %69 = arith.mulf %68, %67 : vector<1x4xf32>
    %70 = arith.addf %63, %65 : vector<1x4xf32>
    %71 = arith.subf %53, %55 : vector<1x4xf32>
    %72 = arith.mulf %71, %71 : vector<1x4xf32>
    %73 = arith.addf %70, %72 : vector<1x4xf32>
    %74 = arith.divf %69, %73 : vector<1x4xf32>
    %cst_25 = arith.constant 1.000000e+00 : f32
    %75 = vector.broadcast %cst_25 : f32 to vector<1x4xf32>
    %76 = arith.subf %75, %74 : vector<1x4xf32>
    %cst_26 = arith.constant 5.000000e-01 : f32
    %77 = vector.broadcast %cst_26 : f32 to vector<1x4xf32>
    %78 = arith.mulf %76, %77 : vector<1x4xf32>
    %c0_27 = arith.constant 0 : index
    %c0_28 = arith.constant 0 : index
    %c0_29 = arith.constant 0 : index
    %79 = vector.load %arg3[%c0_27, %c0_28, %c0_29] : memref<1x1x4xf32, #tpu.memory_space<vmem>>, vector<1x1x4xf32>
    %80 = vector.shape_cast %79 : vector<1x1x4xf32> to vector<1x4xf32>
    %81 = vector.shape_cast %78 : vector<1x4xf32> to vector<1x1x4xf32>
    tpu.vector_store %arg3[%c0_27, %c0_28, %c0_29], %81 {strides = array<i32>} : memref<1x1x4xf32, #tpu.memory_space<vmem>>, vector<1x1x4xf32>,
    return
  }
  func.func @transform_0(%arg0: i32) -> (i32, i32) {
    %c0_i32 = arith.constant 0 : i32
    %c0_i32_0 = arith.constant 0 : i32
    return %c0_i32, %arg0 : i32, i32
  }
  func.func @transform_1(%arg0: i32) -> (i32, i32) {
    %c0_i32 = arith.constant 0 : i32
    %c0_i32_0 = arith.constant 0 : i32
    return %c0_i32, %arg0 : i32, i32
  }
  func.func @transform_2(%arg0: i32) -> (i32, i32, i32) {
    %c0_i32 = arith.constant 0 : i32
    %c0_i32_0 = arith.constant 0 : i32
    %c0_i32_1 = arith.constant 0 : i32
    return %arg0, %c0_i32, %c0_i32_0 : i32, i32, i32
  }
}

</mosaic_0001>

<bundles_post_ra>
// kernel: tpu_custom_call.1
= control target key start
LH: loop header
LB: loop body
LE: loop exit
PB: predicated region body
PF: predicated region fallthrough
CT: control target
= control target key end

     0   :  { %7 = vsyncpa [#allocation3], 0  ;;  %s4641_s0 = inlined_call_operand.hbm [shape: f32[8,1024], index: 0, kind: input, shape index: {}]   ;;  %s4642_s1 = inlined_call_operand.hbm [shape: f32[8,1024], index: 1, kind: input, shape index: {}]   ;;  %s4643_s2 = inlined_call_operand.hbm [shape: f32[2,1,4], index: 2, kind: output, shape index: {}]  }
   0x1   :  { %9 = vsyncpa [#allocation3 + $0x1], 0 }
   0x2   :  { %10 = vsyncpa [#allocation6], 0 }
   0x3   :  { %12 = vsyncpa [#allocation6 + $0x1], 0 }
   0x4   :  { %13 = vsyncpa [#allocation4], 0 }
   0x5   :  { %15 = vsyncpa [#allocation4 + $0x1], 0  ;;  %s2815_s9 = smov 0   ;;  %s2817_s10 = smov 0  }
   0x6   :  { %s2819_s11 = smov 0   ;;  %s2821_s12 = smov 0  }
   0x7 LB: > { %s2836_s13 = sadd.s32 4294967295, %s2793_s12   ;;  %s1855_s14 = sadd.s32 4294967294, %s2793_s12   ;;  %s2793_s12 = sphi %s2821_s12, %s5375_s12   ;;  %s2789_s11 = sphi %s2819_s11, %s5374_s11   ;;  %s2785_s10 = sphi %s2817_s10, %s5373_s10   ;;  %s2781_s9 = sphi %s2815_s9, %s5372_s9  }
   0x8   : > { %s2840_s15 = sadd.s32 1, %s2793_s12   ;;  %s28_s16 = sadd.s32 1, %s2789_s11 }
   0x9   : > { %s25_s17 = ssub.s32 %s2793_s12, %s2840_s15  ;;  %p35_p0 = scmp.ne.s32.totalorder %s2789_s11, %s2785_s10 }
   0xa   : > { %p26_p1 = scmp.eq.s32.totalorder %s25_s17, 0  ;;  %p36_p2 = scmp.eq.s32.totalorder %s2793_s12, 0 }
   0xb   : > { %p41_p3 = scmp.ne.s32.totalorder %s2785_s10, %s2781_s9  ;;  %p42_p4 = scmp.eq.s32.totalorder %s2836_s13, 0 }
   0xc   : > { %s2852_s18 = scalar_select %p26_p1, %s2789_s11, %s28_s16  }
   0xd   : > { %p2854_p5 = por %p36_p2, %p35_p0  ;;  %p2858_p6 = por %p42_p4, %p41_p3 }
   0xe   : > { %p91_p7 = scmp.eq.s32.totalorder %s2836_s13, 1  ;;  %p97_p8 = scmp.eq.s32.totalorder %s1855_s14, 1 }
   0xf   : > { %s4844_s20 = scalar_select %p2858_p6, 1, 0 }
  0x10   : > { %p2629_p10 = scmp.lt.s32.totalorder %s2793_s12, 2  ;;  %p2865_p11 = por %p91_p7, %p35_p0 }
  0x11   : > { %p2869_p12 = por %p97_p8, %p41_p3  ;;  %s2874_s23 = sand.u32 1, %s2789_s11  }
  0x12   : > { %s4845_s21 = scalar_select %p2865_p11, 1, 0 }
  0x13   : > { %s4846_s22 = scalar_select %p2869_p12, 1, 0 }
  0x14   : > { %s2260_s24 = sshll.u32 %s2793_s12, 9  ;;  %s1858_s25 = sshll.u32 %s2874_s23, 5 }
  0x15   : > { %s2883_s28 = scalar_lea.hbm %s4641_s0, %s2260_s24  ;;  %s121_s29 = scalar_lea.vmem [#allocation2], %s1858_s25 }
  0x16   : > { %s129_s30 = sshll.u32 %s121_s29, 4  ;;  %p2889_p13 = pnand %p2629_p10, %p2854_p5  ;;  %s2893_s30 = int_to_ptr.vmem [resolvable:$true] %s129_s30 }
  0x17   : > { %s118_s4 = scalar_lea.sflag [#allocation3], %s2874_s23  ;;  %s2669_s5 = scalar_lea.hbm %s2883_s28, 512 }
  0x18   : > { %p2670_p2 = scmp.ne.s32.totalorder %s2883_s28, %s2669_s5  ;;  %p2671_p3 = pneg %p2889_p13 }
  0x19   : > { %s2674_s8 = scalar_lea.hbm %s4641_s0, 1024  ;;  %p2675_p5 = scmp.lt.s32.totalorder %s2883_s28, %s4641_s0 }
  0x1a   : > { %p2672_p4 = pnand %p2671_p3, %p2670_p2  ;;  %p2676_p8 = scmp.lt.s32.totalorder %s2674_s8, %s2669_s5 }
  0x1c   : > { %p2673_p7 = pneg %p2672_p4  ;;  %p2677_p10 = por %p2676_p8, %p2675_p5 }
  0x1e   : > { %p2678_p9 = pnand %p2677_p10, %p2673_p7 }
  0x20   : > { %2681 = shalt.err (!%p2678_p9)
}
  0x21   : > { %s2682_s17 = scalar_lea.vmem %s2893_s30, 512  ;;  %s2795_s19 = smov [#allocation2]  }
  0x22   : > { %p2683_p0 = scmp.ne.s32.totalorder %s2893_s30, %s2682_s17  ;;  %s2687_s26 = sshll.u32 %s2795_s19, 4  ;;  %s2688_s26 = int_to_ptr.vmem [resolvable:$false] %s2687_s26 }
  0x23   : > { %s2689_s27 = scalar_lea.vmem %s2688_s26, 1024  ;;  %p2690_p1 = scmp.lt.s32.totalorder %s2893_s30, %s2688_s26 }
  0x24   : > { %p2685_p2 = pnand %p2683_p0, %p2671_p3  ;;  %p2691_p12 = scmp.lt.s32.totalorder %s2689_s27, %s2682_s17 }
  0x26   : > { %p2686_p4 = pneg %p2685_p2  ;;  %p2692_p11 = por %p2691_p12, %p2690_p1 }
  0x28   : > { %p2693_p5 = pnand %p2692_p11, %p2686_p4 }
  0x2a   : > { %2696 = shalt.err (!%p2693_p5)
}
  0x2b   : > { %2621 = dma.hbm_to_vmem [thread:$0]  (!%p2889_p13), %s2883_s28, 512, %s2893_s30, %s118_s4  }
  0x2c   : > { %p4848_p9 = scmp.lt.s32.totalorder %s2793_s12, 3  ;;  %p4849_p0 = scmp.ge.s32.totalorder %s2793_s12, 1 }
  0x2d   : > { %s2935_s7 = scalar_lea.hbm %s4642_s1, %s2260_s24  ;;  %s140_s8 = scalar_lea.vmem [#allocation5], %s1858_s25 }
  0x2e   : > { %p2926_p7 = pnand %p4849_p0, %p4848_p9  ;;  %s148_s14 = sshll.u32 %s140_s8, 4  ;;  %s149_s14 = int_to_ptr.vmem [resolvable:$true] %s148_s14 }
  0x2f   : > { %s137_s28 = scalar_lea.sflag [#allocation6], %s2874_s23  ;;  %s2697_s30 = scalar_lea.hbm %s2935_s7, 512 }
  0x30   : > { %s4850_s29 = scalar_select %p2926_p7, 1, 0 }
  0x31   : > { %p2698_p11 = scmp.ne.s32.totalorder %s2935_s7, %s2697_s30  ;;  %s2702_s17 = scalar_lea.hbm %s4642_s1, 1024 }
  0x32   : > { %p2703_p8 = scmp.lt.s32.totalorder %s2935_s7, %s4642_s1  ;;  %p2704_p10 = scmp.lt.s32.totalorder %s2702_s17, %s2697_s30 }
  0x33   : > { %p2700_p12 = pnand %p2698_p11, %p2671_p3 }
  0x34   : > { %p2705_p2 = por %p2704_p10, %p2703_p8 }
  0x35   : > { %p2701_p1 = pneg %p2700_p12 }
  0x37   : > { %p2706_p4 = pnand %p2705_p2, %p2701_p1 }
  0x39   : > { %2709 = shalt.err (!%p2706_p4)
}
  0x3a   : > { %s2710_s25 = scalar_lea.vmem %s149_s14, 512  ;;  %s2796_s23 = smov [#allocation5]  }
  0x3b   : > { %p2711_p5 = scmp.ne.s32.totalorder %s149_s14, %s2710_s25  ;;  %s2715_s26 = sshll.u32 %s2796_s23, 4  ;;  %s2716_s26 = int_to_ptr.vmem [resolvable:$false] %s2715_s26 }
  0x3c   : > { %s2717_s27 = scalar_lea.vmem %s2716_s26, 1024  ;;  %p2718_p11 = scmp.lt.s32.totalorder %s149_s14, %s2716_s26 }
  0x3d   : > { %p2713_p9 = pnand %p2711_p5, %p2671_p3  ;;  %p2719_p12 = scmp.lt.s32.totalorder %s2717_s27, %s2710_s25 }
  0x3f   : > { %p2714_p0 = pneg %p2713_p9  ;;  %p2720_p6 = por %p2719_p12, %p2718_p11 }
  0x41   : > { %p2721_p7 = pnand %p2720_p6, %p2714_p0 }
  0x43   : > { %2724 = shalt.err (!%p2721_p7)
}
  0x44   : > { %2624 = dma.hbm_to_vmem [thread:$0]  (!%p2889_p13), %s2935_s7, 512, %s149_s14, %s137_s28  }
  0x45   : > { %p4851_p1 = scmp.ne.s32.totalorder %s4850_s29, 0 }
  0x47   : > { %157 = sbr.rel (%p4851_p1) target bundleno = 680 (0x2a8), region = 28 }
  0x4c   : > { %s2961_s5 = sand.u32 1, %s2785_s10   ;;  %p4852_p3 = scmp.ne.s32.totalorder %s4844_s20, 0 }
  0x4d   : > { %s1865_s6 = sshll.u32 %s2961_s5, 5  ;;  %s160_s8 = scalar_lea.sflag [#allocation3], %s2961_s5 }
  0x4e   : > { %s163_s30 = scalar_lea.vmem [#allocation2], %s1865_s6 }
  0x4f   : > { %2768 = dma.done.wait (%p4852_p3), %s160_s8, 512  }
  0x50   : > { %2770 = vsyncadd (%p4852_p3), %s160_s8, 4294966784  ;;  %s169_s3 = scalar_lea.sflag [#allocation6], %s2961_s5  ;;  %s2970_s7 = scalar_lea.vmem [#allocation5], %s1865_s6 }
  0x51   : > { %2772 = dma.done.wait (%p4852_p3), %s169_s3, 512  }
  0x52   : > { %2774 = vsyncadd (%p4852_p3), %s169_s3, 4294966784  ;;  %v199_v0 = vlaneseq  ;;  %v2797_v1 = vmov 0.0   ;;  %v216_v6 = vld [vmem:[%s163_s30 + $0x8] sm:$0xff]  ;;  %v218_v7 = vld [vmem:[%s163_s30 + $0x18] sm:$0xff]  ;;  %v4853_v33 = vmov 0  ;;  %v4856_v35 = vmov 0 }
  0x53   : > { %291 = vmatprep.mubr.f32.mxu0 %v2797_v1  ;;  %362 = vmatprep.mubr.f32.mxu1 %v2797_v1  ;;  %v215_v8 = vld [vmem:[%s163_s30] sm:$0xff]  ;;  %v217_v9 = vld [vmem:[%s163_s30 + $0x10] sm:$0xff]  ;;  %v220_v11 = vld [vmem:[%s2970_s7 + $0x8] sm:$0xff]  ;;  %v4859_v38 = vmov 0  ;;  %v4861_v39 = vmov 0  ;;  %v4864_v41 = vmov 0 }
  0x54   : > { %v2978_v2 = vshrl.u32 %v199_v0, 7  ;;  %v2980_v3 = vand.u32 127, %v199_v0  ;;  %257 = vmatprep.subr.mxu0 %v216_v6  ;;  %328 = vmatprep.subr.mxu1 %v218_v7  ;;  %v222_v12 = vld [vmem:[%s2970_s7 + $0x18] sm:$0xff]  ;;  %v4866_v42 = vmov 0  ;;  %v4870_v45 = vmov 0  ;;  %v219_v52 = vld [vmem:[%s2970_s7] sm:$0xff] }
  0x55   : > { %258 = vmatpush1.msra.mxu0 %v215_v8  ;;  %329 = vmatpush1.msra.mxu1 %v217_v9  ;;  %v4874_v46 = vmov 0  ;;  %v4877_v48 = vmov 0  ;;  %v4881_v49 = vmov 0  ;;  %v4886_v53 = vmov 0  ;;  %v221_v57 = vld [vmem:[%s2970_s7 + $0x10] sm:$0xff]  ;;  %s2257_s20 = sshll.u32 %s2836_s13, 4 }
  0x56   : > { %v203_v4 = vsub.s32 %v2978_v2, %v2980_v3  ;;  %v771_v14 = vadd.s32 1, %v2980_v3  ;;  %399 = vmatprep.subr.mxu0 %v220_v11  ;;  %470 = vmatprep.subr.mxu1 %v222_v12  ;;  %v2988_v16 = vmul.u32 128, %v2980_v3  ;;  %v673_v17 = vadd.s32 248, %v2978_v2  ;;  %s196_s29 = scalar_lea.vmem [#allocation7], %s2961_s5  ;;  %s1764_s16 = scalar_lea.hbm %s4643_s2, %s2257_s20 }
  0x57   : > { %v705_v18 = vadd.s32 504, %v2978_v2  ;;  %v657_v19 = vadd.s32 120, %v2978_v2  ;;  %v689_v20 = vadd.s32 376, %v2978_v2  ;;  %v672_v22 = vadd.s32 240, %v2978_v2  ;;  %s1766_s14 = sshll.u32 %s196_s29, 4  ;;  %s1754_s17 = scalar_lea.sflag [#allocation4], %s2961_s5  ;;  %s1767_s14 = int_to_ptr.vmem [resolvable:$true] %s1766_s14 }
  0x58   : > { %vm204_vm0 = vcmp.gt.s32.totalorder %v203_v4, 0  ;;  %v1867_v5 = vcvt.s32.f32 %v203_v4  ;;  %v2994_v21 = vmul.u32 128, %v771_v14  ;;  %vm738_vm1 = vcmp.ge.s32.totalorder %v673_v17, %v2988_v16  ;;  %s2725_s24 = scalar_lea.vmem %s1767_s14, 16  ;;  %p5369_p13 = scmp.ne.s32.totalorder %s4845_s21, 0 }
  0x59   : > { %v704_v23 = vadd.s32 496, %v2978_v2  ;;  %v656_v24 = vadd.s32 112, %v2978_v2  ;;  %vm770_vm2 = vcmp.ge.s32.totalorder %v705_v18, %v2988_v16  ;;  %vm722_vm3 = vcmp.ge.s32.totalorder %v657_v19, %v2988_v16  ;;  %p2726_p6 = scmp.ne.s32.totalorder %s1767_s14, %s2725_s24  ;;  %s2799_s19 = smov [#allocation7]  }
  0x5a   : > { %v1868_v10 = vsel %vm204_vm0, %v1867_v5, 0.0  ;;  %vm754_vm4 = vcmp.ge.s32.totalorder %v689_v20, %v2988_v16  ;;  %v688_v25 = vadd.s32 368, %v2978_v2  ;;  %vm804_vm6 = vcmp.lt.s32.totalorder %v673_v17, %v2994_v21  ;;  %s2729_s25 = sshll.u32 %s2799_s19, 4  ;;  %s2730_s25 = int_to_ptr.vmem [resolvable:$false] %s2729_s25 }
  0x5b   : > { %v207_v13 = vmul.f32 -2.3025851, %v1868_v10  ;;  %vm836_vm7 = vcmp.lt.s32.totalorder %v705_v18, %v2994_v21  ;;  %v671_v26 = vadd.s32 232, %v2978_v2  ;;  %vm788_vm10 = vcmp.lt.s32.totalorder %v657_v19, %v2994_v21  ;;  %vm3031_vm0 = vmand %vm738_vm1, %vm804_vm6  ;;  %p2727_p7 = pnand %p2726_p6, %p5369_p13  ;;  %s2731_s13 = scalar_lea.vmem %s2730_s25, 32 }
  0x5c   : > { %vm820_vm11 = vcmp.lt.s32.totalorder %v689_v20, %v2994_v21  ;;  %vm803_vm12 = vcmp.lt.s32.totalorder %v672_v22, %v2994_v21  ;;  %v703_v27 = vadd.s32 488, %v2978_v2  ;;  %vm769_vm14 = vcmp.ge.s32.totalorder %v704_v23, %v2988_v16  ;;  %vm3043_vm13 = vmand %vm770_vm2, %vm836_vm7  ;;  %p2732_p10 = scmp.lt.s32.totalorder %s1767_s14, %s2730_s25  ;;  %p2733_p2 = scmp.lt.s32.totalorder %s2731_s13, %s2725_s24 }
  0x5d   : > { %v208_v15 = vmul.f32 1.442695, %v207_v13  ;;  %vm835_vm15 = vcmp.lt.s32.totalorder %v704_v23, %v2994_v21  ;;  %v655_v28 = vadd.s32 104, %v2978_v2  ;;  %v687_v29 = vadd.s32 360, %v2978_v2  ;;  %vm3055_vm5 = vmand %vm722_vm3, %vm788_vm10  ;;  %p2728_p8 = pneg %p2727_p7 }
  0x5e   : > { %v670_v30 = vadd.s32 224, %v2978_v2  ;;  %v702_v31 = vadd.s32 480, %v2978_v2  ;;  %v654_v32 = vadd.s32 96, %v2978_v2  ;;  %v4854_v33 = vsel %vm3031_vm0, 4294967295, %v4853_v33  ;;  %vm3063_vm2 = vmand %vm754_vm4, %vm820_vm11  ;;  %p2734_p4 = por %p2733_p2, %p2732_p10 }
  0x5f   : > { %2665 = vpow2.f32 %v208_v15  ;;  %4855 = vst [vmem:[#allocation11_spill] sm:$0xff] %v4854_v33  ;;  %vm802_vm9 = vcmp.lt.s32.totalorder %v671_v26, %v2994_v21  ;;  %v686_v34 = vadd.s32 352, %v2978_v2  ;;  %v4857_v35 = vsel %vm3043_vm13, 4294967295, %v4856_v35  ;;  %vm3083_vm4 = vmand %vm769_vm14, %vm835_vm15 }
  0x60   : > { %4858 = vst [vmem:[#allocation12_spill] sm:$0xff] %v4857_v35  ;;  %v669_v36 = vadd.s32 216, %v2978_v2  ;;  %v701_v37 = vadd.s32 472, %v2978_v2  ;;  %v4860_v38 = vsel %vm3055_vm5, 4294967295, %v4859_v38  ;;  %v4862_v39 = vsel %vm3063_vm2, 4294967295, %v4861_v39  ;;  %p2735_p5 = pnand %p2734_p4, %p2728_p8 }
  0x61   : > { %vm4863_vm3 = vcmp.ge.s32.totalorder %v672_v22, %v2988_v16  ;;  %v4867_v42 = vsel %vm3083_vm4, 4294967295, %v4866_v42  ;;  %v653_v43 = vadd.s32 88, %v2978_v2  ;;  %vm4872_vm14 = vcmp.lt.s32.totalorder %v688_v25, %v2994_v21 }
  0x62   : > { %vm3075_vm10 = vmand %vm4863_vm3, %vm803_vm12  ;;  %vm4868_vm12 = vcmp.lt.s32.totalorder %v656_v24, %v2994_v21  ;;  %vm4869_vm3 = vcmp.ge.s32.totalorder %v656_v24, %v2988_v16  ;;  %vm4873_vm15 = vcmp.ge.s32.totalorder %v688_v25, %v2988_v16  ;;  %v685_v47 = vadd.s32 344, %v2978_v2 }
  0x63   : > { %v4865_v41 = vsel %vm3075_vm10, 4294967295, %v4864_v41  ;;  %vm3095_vm7 = vmand %vm4869_vm3, %vm4868_vm12  ;;  %vm4876_vm12 = vcmp.ge.s32.totalorder %v671_v26, %v2988_v16  ;;  %v668_v50 = vadd.s32 208, %v2978_v2  ;;  %vm4889_vm8 = vcmp.ge.s32.totalorder %v687_v29, %v2988_v16 }
  0x64   : > { %v4871_v45 = vsel %vm3095_vm7, 4294967295, %v4870_v45  ;;  %vm3103_vm11 = vmand %vm4873_vm15, %vm4872_vm14  ;;  %vm4879_vm14 = vcmp.lt.s32.totalorder %v703_v27, %v2994_v21  ;;  %vm4880_vm15 = vcmp.ge.s32.totalorder %v703_v27, %v2988_v16  ;;  %v4890_v54 = vmov 0 }
  0x65   : > { %v4875_v46 = vsel %vm3103_vm11, 4294967295, %v4874_v46  ;;  %vm3114_vm3 = vmand %vm4876_vm12, %vm802_vm9  ;;  %vm4883_vm9 = vcmp.eq.s32.totalorder %v2980_v3, 0  ;;  %vm4884_vm12 = vcmp.lt.s32.totalorder %v655_v28, %v2994_v21  ;;  %v700_v55 = vadd.s32 464, %v2978_v2 }
  0x66   : > { %v4878_v48 = vsel %vm3114_vm3, 4294967295, %v4877_v48  ;;  %vm3122_vm1 = vmand %vm4880_vm15, %vm4879_vm14  ;;  %vm4885_vm3 = vcmp.ge.s32.totalorder %v655_v28, %v2988_v16  ;;  %vm4888_vm15 = vcmp.lt.s32.totalorder %v687_v29, %v2994_v21  ;;  %v4895_v58 = vmov 0 }
  0x67   : > { %v4882_v49 = vsel %vm3122_vm1, 4294967295, %v4881_v49  ;;  %vm3137_vm14 = vmand %vm4885_vm3, %vm4884_vm12  ;;  %vm4892_vm3 = vcmp.le.s32.totalorder %v2980_v3, %v2978_v2  ;;  %vm4893_vm12 = vcmp.lt.s32.totalorder %v670_v30, %v2994_v21  ;;  %v4899_v59 = vmov 0 }
  0x68   : > { %v4887_v53 = vsel %vm3137_vm14, 4294967295, %v4886_v53  ;;  %vm3145_vm6 = vmand %vm4889_vm8, %vm4888_vm15  ;;  %vm4894_vm14 = vcmp.ge.s32.totalorder %v670_v30, %v2988_v16  ;;  %vm4897_vm8 = vcmp.lt.s32.totalorder %v702_v31, %v2994_v21  ;;  %vm4898_vm15 = vcmp.ge.s32.totalorder %v702_v31, %v2988_v16 }
  0x69   : > { %v4891_v54 = vsel %vm3145_vm6, 4294967295, %v4890_v54  ;;  %vm3160_vm1 = vmand %vm4894_vm14, %vm4893_vm12  ;;  %v652_v60 = vadd.s32 80, %v2978_v2  ;;  %vm4901_vm6 = vcmask 64512   ;;  %vm4903_vm12 = vcmp.lt.s32.totalorder %v654_v32, %v2994_v21 }
  0x6a   : > { %v4896_v58 = vsel %vm3160_vm1, 4294967295, %v4895_v58  ;;  %vm3168_vm11 = vmand %vm4898_vm15, %vm4897_vm8  ;;  %vm4904_vm1 = vcmp.ge.s32.totalorder %v654_v32, %v2988_v16  ;;  %v4905_v61 = vmov 0  ;;  %vm4907_vm8 = vcmp.lt.s32.totalorder %v686_v34, %v2994_v21 }
  0x6b   : > { %v4900_v59 = vsel %vm3168_vm11, 4294967295, %v4899_v59  ;;  %vm4902_vm14 = vmmov %vm4901_vm6  ;;  %vm4908_vm15 = vcmp.ge.s32.totalorder %v686_v34, %v2988_v16  ;;  %v4909_v62 = vmov 0  ;;  %v684_v63 = vadd.s32 336, %v2978_v2 }
  0x6c   : > { %v2666_v40 = vpop.eup %2665  ;;  %vm3181_vm7 = vmand %vm4904_vm1, %vm4903_vm12  ;;  %vm4911_vm1 = vcmp.lt.s32.totalorder %v669_v36, %v2994_v21  ;;  %vm4912_vm12 = vcmp.ge.s32.totalorder %v669_v36, %v2988_v16  ;;  %v4913_v0 = vmov 0  ;;  %v4917_v3 = vmov 0 }
  0x6d   : > { %v211_v44 = vmul.f32 0.9, %v2666_v40  ;;  %v4906_v61 = vsel %vm3181_vm7, 4294967295, %v4905_v61  ;;  %v667_v4 = vadd.s32 200, %v2978_v2  ;;  %v4921_v5 = vmov 0 }
  0x6e   : > { %v699_v6 = vadd.s32 456, %v2978_v2  ;;  %v4763_v7 = vmov 1.0   ;;  %v651_v8 = vadd.s32 72, %v2978_v2  ;;  %v4931_v9 = vmov 0 }
  0x6f   : > { %v212_v51 = vsel %vm4883_vm9, %v2666_v40, %v211_v44  ;;  %vm3189_vm9 = vmand %vm4908_vm15, %vm4907_vm8  ;;  %vm4915_vm8 = vcmp.lt.s32.totalorder %v701_v37, %v2994_v21  ;;  %vm4916_vm15 = vcmp.ge.s32.totalorder %v701_v37, %v2988_v16  ;;  %v683_v10 = vadd.s32 328, %v2978_v2 }
  0x70   : > { %v214_v56 = vsel %vm4892_vm3, %v212_v51, 0.0  ;;  %v4910_v62 = vsel %vm3189_vm9, 4294967295, %v4909_v62  ;;  %vm3201_vm3 = vmand %vm4912_vm12, %vm4911_vm1  ;;  %vm4919_vm1 = vcmp.lt.s32.totalorder %v653_v43, %v2994_v21  ;;  %vm4920_vm12 = vcmp.ge.s32.totalorder %v653_v43, %v2988_v16 }
  0x71   : > { %1869 = vmatmul.mubr.msk.f32.vlgmr.msra.gmra.mxu0 %vm4901_vm6, %v214_v56  ;;  %1870 = vmatmul.mubr.msk.f32.vlgmr.msra.gmra.mxu1 %vm4902_vm14, %v214_v56  ;;  %v4914_v0 = vsel %vm3201_vm3, 4294967295, %v4913_v0  ;;  %vm3209_vm6 = vmand %vm4916_vm15, %vm4915_vm8  ;;  %vm717_vm8 = vcmp.ge.s32.totalorder %v652_v60, %v2988_v16  ;;  %vm783_vm15 = vcmp.lt.s32.totalorder %v652_v60, %v2994_v21  ;;  %vm4927_vm9 = vcmask 64512  }
  0x72   : > { %400 = vmatpush1.msra.mxu0 %v219_v52  ;;  %433 = vmatprep.mubr.f32.mxu0 %v2797_v1  ;;  %v4918_v3 = vsel %vm3209_vm6, 4294967295, %v4917_v3  ;;  %vm3221_vm3 = vmand %vm4920_vm12, %vm4919_vm1  ;;  %vm4923_vm1 = vcmp.lt.s32.totalorder %v685_v47, %v2994_v21  ;;  %vm4924_vm12 = vcmp.ge.s32.totalorder %v685_v47, %v2988_v16  ;;  %v4935_v11 = vmov 0 }
  0x73   : > { %471 = vmatpush1.msra.mxu1 %v221_v57  ;;  %504 = vmatprep.mubr.f32.mxu1 %v2797_v1  ;;  %v4922_v5 = vsel %vm3221_vm3, 4294967295, %v4921_v5  ;;  %vm3238_vm14 = vmand %vm4924_vm12, %vm4923_vm1  ;;  %v4925_v1 = vmov 0  ;;  %vm4930_vm3 = vcmp.ge.s32.totalorder %v668_v50, %v2988_v16  ;;  %v666_v12 = vadd.s32 192, %v2978_v2 }
  0x74   : > { %2262 = vmatprep.subr.msk.mxu0 %vm3031_vm0, %v4763_v7  ;;  %2297 = vmatprep.subr.msk.mxu1 %vm3043_vm13, %v4763_v7  ;;  %v4926_v1 = vsel %vm3238_vm14, 4294967295, %v4925_v1  ;;  %vm4928_vm0 = vmmov %vm4927_vm9  ;;  %vm4929_vm13 = vcmp.lt.s32.totalorder %v668_v50, %v2994_v21  ;;  %v4937_v13 = vmov 0  ;;  %v698_v14 = vadd.s32 448, %v2978_v2 }
  0x75   : > { %1871 = vmatmul.mubr.msk.f32.vlgmr.msra.gmra.mxu0 %vm4927_vm9, %v214_v56  ;;  %1872 = vmatmul.mubr.msk.f32.vlgmr.msra.gmra.mxu1 %vm4928_vm0, %v214_v56  ;;  %vm3251_vm6 = vmand %vm4930_vm3, %vm4929_vm13  ;;  %vm4933_vm0 = vcmp.lt.s32.totalorder %v700_v55, %v2994_v21  ;;  %vm4934_vm13 = vcmp.ge.s32.totalorder %v700_v55, %v2988_v16  ;;  %vm4939_vm1 = vnez %v4871_v45  ;;  %vm4940_vm12 = vnez %v4875_v46 }
  0x76   : > { %v4932_v9 = vsel %vm3251_vm6, 4294967295, %v4931_v9  ;;  %2263 = vmatpush3.msk.msra.mxu0 %vm3055_vm5, %v4763_v7  ;;  %2298 = vmatpush3.msk.msra.mxu1 %vm3063_vm2, %v4763_v7  ;;  %vm3268_vm9 = vmand %vm4934_vm13, %vm4933_vm0  ;;  %v4943_v15 = vmov 0  ;;  %v650_v17 = vadd.s32 64, %v2978_v2  ;;  %v4949_v18 = vmov 0 }
  0x77   : > { %v4936_v11 = vsel %vm3268_vm9, 4294967295, %v4935_v11  ;;  %2264 = vmatprep.subr.msk.mxu0 %vm3075_vm10, %v4763_v7  ;;  %2299 = vmatprep.subr.msk.mxu1 %vm3083_vm4, %v4763_v7  ;;  %vm3285_vm0 = vmand %vm717_vm8, %vm783_vm15  ;;  %vm4941_vm4 = vcmp.lt.s32.totalorder %v684_v63, %v2994_v21  ;;  %vm4942_vm8 = vcmp.ge.s32.totalorder %v684_v63, %v2988_v16  ;;  %vm4947_vm10 = vcmp.lt.s32.totalorder %v667_v4, %v2994_v21 }
  0x78   : > { %v4938_v13 = vsel %vm3285_vm0, 4294967295, %v4937_v13  ;;  %2265 = vmatpush3.msk.msra.mxu0 %vm4939_vm1, %v4763_v7  ;;  %2300 = vmatpush3.msk.msra.mxu1 %vm4940_vm12, %v4763_v7  ;;  %vm3302_vm15 = vmand %vm4942_vm8, %vm4941_vm4  ;;  %vm4945_vm1 = vnez %v4878_v48  ;;  %vm4946_vm12 = vnez %v4882_v49  ;;  %vm4948_vm4 = vcmp.ge.s32.totalorder %v667_v4, %v2988_v16 }
  0x79   : > { %v4944_v15 = vsel %vm3302_vm15, 4294967295, %v4943_v15  ;;  %2266 = vmatprep.subr.msk.mxu0 %vm4945_vm1, %v4763_v7  ;;  %2301 = vmatprep.subr.msk.mxu1 %vm4946_vm12, %v4763_v7  ;;  %vm3319_vm8 = vmand %vm4948_vm4, %vm4947_vm10  ;;  %v682_v19 = vadd.s32 320, %v2978_v2  ;;  %vm4951_vm1 = vnez %v4887_v53  ;;  %vm4952_vm12 = vnez %v4891_v54 }
  0x7a   : > { %v4950_v18 = vsel %vm3319_vm8, 4294967295, %v4949_v18  ;;  %2267 = vmatpush3.msk.msra.mxu0 %vm4951_vm1, %v4763_v7  ;;  %2302 = vmatpush3.msk.msra.mxu1 %vm4952_vm12, %v4763_v7  ;;  %vm4953_vm2 = vcmp.lt.s32.totalorder %v699_v6, %v2994_v21  ;;  %vm4954_vm10 = vcmp.ge.s32.totalorder %v699_v6, %v2988_v16  ;;  %v4955_v20 = vmov 0 }
  0x7b   : > { %vm3336_vm4 = vmand %vm4954_vm10, %vm4953_vm2  ;;  %v665_v22 = vadd.s32 184, %v2978_v2  ;;  %vm4957_vm1 = vnez %v4896_v58  ;;  %2303 = vmatprep.subr.msk.mxu1 %vm3168_vm11, %v4763_v7  ;;  %vm4958_vm12 = vcmp.lt.s32.totalorder %v651_v8, %v2994_v21  ;;  %vm4959_vm2 = vcmp.ge.s32.totalorder %v651_v8, %v2988_v16 }
  0x7c   : > { %v4956_v20 = vsel %vm3336_vm4, 4294967295, %v4955_v20  ;;  %2268 = vmatprep.subr.msk.mxu0 %vm4957_vm1, %v4763_v7  ;;  %vm3353_vm10 = vmand %vm4959_vm2, %vm4958_vm12  ;;  %v4960_v23 = vmov 0  ;;  %vm829_vm3 = vcmp.lt.s32.totalorder %v698_v14, %v2994_v21  ;;  %v697_v24 = vadd.s32 440, %v2978_v2 }
  0x7d   : > { %v4961_v23 = vsel %vm3353_vm10, 4294967295, %v4960_v23  ;;  %2269 = vmatpush3.msk.msra.mxu0 %vm3181_vm7, %v4763_v7  ;;  %vm4962_vm11 = vnez %v4910_v62  ;;  %vm4963_vm1 = vcmp.lt.s32.totalorder %v683_v10, %v2994_v21  ;;  %vm4964_vm12 = vcmp.ge.s32.totalorder %v683_v10, %v2988_v16 }
  0x7e   : > { %2304 = vmatpush3.msk.msra.mxu1 %vm4962_vm11, %v4763_v7  ;;  %vm3370_vm2 = vmand %vm4964_vm12, %vm4963_vm1  ;;  %v4965_v25 = vmov 0  ;;  %vm715_vm13 = vcmp.ge.s32.totalorder %v650_v17, %v2988_v16  ;;  %vm781_vm5 = vcmp.lt.s32.totalorder %v650_v17, %v2994_v21  ;;  %vm4967_vm10 = vnez %v4914_v0 }
  0x7f   : > { %v4966_v25 = vsel %vm3370_vm2, 4294967295, %v4965_v25  ;;  %2270 = vmatprep.subr.msk.mxu0 %vm4967_vm10, %v4763_v7  ;;  %vm4968_vm7 = vnez %v4918_v3  ;;  %vm4969_vm11 = vcmp.lt.s32.totalorder %v666_v12, %v2994_v21  ;;  %vm4970_vm4 = vcmp.ge.s32.totalorder %v666_v12, %v2988_v16 }
  0x80   : > { %2305 = vmatprep.subr.msk.mxu1 %vm4968_vm7, %v4763_v7  ;;  %vm3386_vm1 = vmand %vm4970_vm4, %vm4969_vm11  ;;  %v4971_v26 = vmov 0  ;;  %vm747_vm12 = vcmp.ge.s32.totalorder %v682_v19, %v2988_v16  ;;  %vm813_vm2 = vcmp.lt.s32.totalorder %v682_v19, %v2994_v21  ;;  %vm4973_vm8 = vnez %v4922_v5 }
  0x81   : > { %v4972_v26 = vsel %vm3386_vm1, 4294967295, %v4971_v26  ;;  %2271 = vmatpush3.msk.msra.mxu0 %vm4973_vm8, %v4763_v7  ;;  %2306 = vmatpush3.msk.msra.mxu1 %vm3238_vm14, %v4763_v7  ;;  %vm4974_vm7 = vcmp.ge.s32.totalorder %v698_v14, %v2988_v16  ;;  %v4975_v27 = vmov 0  ;;  %vm730_vm11 = vcmp.ge.s32.totalorder %v665_v22, %v2988_v16  ;;  %vm3412_vm8 = vmand %vm715_vm13, %vm781_vm5 }
  0x82   : > { %vm3400_vm10 = vmand %vm4974_vm7, %vm829_vm3  ;;  %vm796_vm4 = vcmp.lt.s32.totalorder %v665_v22, %v2994_v21  ;;  %2272 = vmatprep.subr.msk.mxu0 %vm3251_vm6, %v4763_v7  ;;  %2307 = vmatprep.subr.msk.mxu1 %vm3268_vm9, %v4763_v7  ;;  %v4977_v28 = vmov 0  ;;  %vm762_vm7 = vcmp.ge.s32.totalorder %v697_v24, %v2988_v16  ;;  %vm828_vm3 = vcmp.lt.s32.totalorder %v697_v24, %v2994_v21 }
  0x83   : > { %v4976_v27 = vsel %vm3400_vm10, 4294967295, %v4975_v27  ;;  %v4978_v28 = vsel %vm3412_vm8, 4294967295, %v4977_v28  ;;  %2273 = vmatpush3.msk.msra.mxu0 %vm3285_vm0, %v4763_v7  ;;  %2308 = vmatpush3.msk.msra.mxu1 %vm3302_vm15, %v4763_v7  ;;  %vm3424_vm6 = vmand %vm747_vm12, %vm813_vm2  ;;  %v4979_v29 = vmov 0  ;;  %vm4981_vm5 = vnez %v4950_v18 }
  0x84   : > { %v4980_v29 = vsel %vm3424_vm6, 4294967295, %v4979_v29  ;;  %2274 = vmatprep.subr.msk.mxu0 %vm4981_vm5, %v4763_v7  ;;  %vm4982_vm13 = vnez %v4956_v20  ;;  %vm3434_vm9 = vmand %vm730_vm11, %vm796_vm4  ;;  %v4983_v30 = vmov 0  ;;  %vm4985_vm0 = vnez %v4961_v23 }
  0x85   : > { %2309 = vmatprep.subr.msk.mxu1 %vm4982_vm13, %v4763_v7  ;;  %v4984_v30 = vsel %vm3434_vm9, 4294967295, %v4983_v30  ;;  %2275 = vmatpush3.msk.msra.mxu0 %vm4985_vm0, %v4763_v7  ;;  %vm4986_vm2 = vnez %v4966_v25  ;;  %vm3444_vm12 = vmand %vm762_vm7, %vm828_vm3  ;;  %v4987_v31 = vmov 0  ;;  %v649_v32 = vadd.s32 56, %v2978_v2 }
  0x86   : > { %2310 = vmatpush3.msk.msra.mxu1 %vm4986_vm2, %v4763_v7  ;;  %v4988_v31 = vsel %vm3444_vm12, 4294967295, %v4987_v31  ;;  %2276 = vmatprep.subr.msk.mxu0 %vm3386_vm1, %v4763_v7  ;;  %v681_v34 = vadd.s32 312, %v2978_v2  ;;  %v664_v36 = vadd.s32 176, %v2978_v2  ;;  %v696_v37 = vadd.s32 432, %v2978_v2 }
  0x87   : > { %2311 = vmatprep.subr.msk.mxu1 %vm3400_vm10, %v4763_v7  ;;  %2277 = vmatpush3.msk.msra.mxu0 %vm3412_vm8, %v4763_v7  ;;  %vm714_vm11 = vcmp.ge.s32.totalorder %v649_v32, %v2988_v16  ;;  %vm780_vm4 = vcmp.lt.s32.totalorder %v649_v32, %v2994_v21  ;;  %v4989_v40 = vmov 0  ;;  %v4991_v43 = vmov 0 }
  0x88   : > { %2312 = vmatpush3.msk.msra.mxu1 %vm3424_vm6, %v4763_v7  ;;  %2278 = vmatprep.subr.msk.mxu0 %vm3434_vm9, %v4763_v7  ;;  %vm746_vm7 = vcmp.ge.s32.totalorder %v681_v34, %v2988_v16  ;;  %vm812_vm3 = vcmp.lt.s32.totalorder %v681_v34, %v2994_v21  ;;  %vm3474_vm9 = vmand %vm714_vm11, %vm780_vm4  ;;  %vm795_vm6 = vcmp.lt.s32.totalorder %v664_v36, %v2994_v21  ;;  %v648_v44 = vadd.s32 48, %v2978_v2 }
  0x89   : > { %2313 = vmatprep.subr.msk.mxu1 %vm3444_vm12, %v4763_v7  ;;  %v4990_v40 = vsel %vm3474_vm9, 4294967295, %v4989_v40  ;;  %vm729_vm12 = vcmp.ge.s32.totalorder %v664_v36, %v2988_v16  ;;  %vm761_vm8 = vcmp.ge.s32.totalorder %v696_v37, %v2988_v16  ;;  %vm827_vm10 = vcmp.lt.s32.totalorder %v696_v37, %v2994_v21  ;;  %2279 = vmatpush3.msk.msra.mxu0 %vm3474_vm9, %v4763_v7  ;;  %vm3485_vm1 = vmand %vm746_vm7, %vm812_vm3 }
  0x8a   : > { %v4992_v43 = vsel %vm3485_vm1, 4294967295, %v4991_v43  ;;  %v680_v47 = vadd.s32 304, %v2978_v2  ;;  %v663_v50 = vadd.s32 168, %v2978_v2  ;;  %v695_v51 = vadd.s32 424, %v2978_v2  ;;  %2314 = vmatpush3.msk.msra.mxu1 %vm3485_vm1, %v4763_v7  ;;  %vm3496_vm11 = vmand %vm729_vm12, %vm795_vm6 }
  0x8b   : > { %v4993_v52 = vmov 0  ;;  %2280 = vmatprep.subr.msk.mxu0 %vm3496_vm11, %v4763_v7  ;;  %vm3503_vm4 = vmand %vm761_vm8, %vm827_vm10  ;;  %v4995_v55 = vmov 0  ;;  %vm713_vm7 = vcmp.ge.s32.totalorder %v648_v44, %v2988_v16  ;;  %vm779_vm3 = vcmp.lt.s32.totalorder %v648_v44, %v2994_v21 }
  0x8c   : > { %v4994_v52 = vsel %vm3496_vm11, 4294967295, %v4993_v52  ;;  %v4996_v55 = vsel %vm3503_vm4, 4294967295, %v4995_v55  ;;  %vm745_vm9 = vcmp.ge.s32.totalorder %v680_v47, %v2988_v16  ;;  %vm811_vm1 = vcmp.lt.s32.totalorder %v680_v47, %v2994_v21  ;;  %2315 = vmatprep.subr.msk.mxu1 %vm3503_vm4, %v4763_v7  ;;  %vm3514_vm6 = vmand %vm713_vm7, %vm779_vm3 }
  0x8d   : > { %v4997_v56 = vmov 0  ;;  %vm728_vm8 = vcmp.ge.s32.totalorder %v663_v50, %v2988_v16  ;;  %vm794_vm10 = vcmp.lt.s32.totalorder %v663_v50, %v2994_v21  ;;  %vm760_vm12 = vcmp.ge.s32.totalorder %v695_v51, %v2988_v16  ;;  %2281 = vmatpush3.msk.msra.mxu0 %vm3514_vm6, %v4763_v7  ;;  %vm3525_vm2 = vmand %vm745_vm9, %vm811_vm1 }
  0x8e   : > { %v4998_v56 = vsel %vm3514_vm6, 4294967295, %v4997_v56  ;;  %vm826_vm11 = vcmp.lt.s32.totalorder %v695_v51, %v2994_v21  ;;  %v4999_v57 = vmov 0  ;;  %2316 = vmatpush3.msk.msra.mxu1 %vm3525_vm2, %v4763_v7  ;;  %vm3532_vm7 = vmand %vm728_vm8, %vm794_vm10  ;;  %v5002_v60 = vmov 0 }
  0x8f   : > { %v5000_v57 = vsel %vm3525_vm2, 4294967295, %v4999_v57  ;;  %v5003_v60 = vsel %vm3532_vm7, 4294967295, %v5002_v60  ;;  %v647_v63 = vadd.s32 40, %v2978_v2  ;;  %v679_v4 = vadd.s32 296, %v2978_v2  ;;  %2282 = vmatprep.subr.msk.mxu0 %vm3532_vm7, %v4763_v7  ;;  %vm3541_vm9 = vmand %vm760_vm12, %vm826_vm11 }
  0x90   : > { %5001 = vst [vmem:[#allocation13_spill] sm:$0xff] %v5000_v57  ;;  %5004 = vst [vmem:[#allocation14_spill] sm:$0xff] %v5003_v60  ;;  %v5005_v6 = vmov 0  ;;  %v662_v8 = vadd.s32 160, %v2978_v2  ;;  %v694_v10 = vadd.s32 416, %v2978_v2  ;;  %2317 = vmatprep.subr.msk.mxu1 %vm3541_vm9, %v4763_v7  ;;  %v5008_v12 = vmov 0 }
  0x91   : > { %v5006_v6 = vsel %vm3541_vm9, 4294967295, %v5005_v6  ;;  %vm712_vm1 = vcmp.ge.s32.totalorder %v647_v63, %v2988_v16  ;;  %vm778_vm3 = vcmp.lt.s32.totalorder %v647_v63, %v2994_v21  ;;  %vm744_vm8 = vcmp.ge.s32.totalorder %v679_v4, %v2988_v16 }
  0x92   : > { %5007 = vst [vmem:[#allocation15_spill] sm:$0xff] %v5006_v6  ;;  %vm810_vm10 = vcmp.lt.s32.totalorder %v679_v4, %v2994_v21  ;;  %vm3554_vm11 = vmand %vm712_vm1, %vm778_vm3  ;;  %vm727_vm12 = vcmp.ge.s32.totalorder %v662_v8, %v2988_v16  ;;  %vm793_vm7 = vcmp.lt.s32.totalorder %v662_v8, %v2994_v21  ;;  %vm759_vm2 = vcmp.ge.s32.totalorder %v694_v10, %v2988_v16 }
  0x93   : > { %v5009_v12 = vsel %vm3554_vm11, 4294967295, %v5008_v12  ;;  %vm825_vm9 = vcmp.lt.s32.totalorder %v694_v10, %v2994_v21  ;;  %2283 = vmatpush3.msk.msra.mxu0 %vm3554_vm11, %v4763_v7  ;;  %vm3565_vm6 = vmand %vm744_vm8, %vm810_vm10  ;;  %v5011_v14 = vmov 0  ;;  %v5014_v17 = vmov 0 }
  0x94   : > { %5010 = vst [vmem:[#allocation16_spill] sm:$0xff] %v5009_v12  ;;  %v5012_v14 = vsel %vm3565_vm6, 4294967295, %v5011_v14  ;;  %2318 = vmatpush3.msk.msra.mxu1 %vm3565_vm6, %v4763_v7  ;;  %vm3572_vm1 = vmand %vm727_vm12, %vm793_vm7  ;;  %v5017_v19 = vmov 0  ;;  %v646_v22 = vadd.s32 32, %v2978_v2  ;;  %v678_v24 = vadd.s32 288, %v2978_v2 }
  0x95   : > { %5013 = vst [vmem:[#allocation17_spill] sm:$0xff] %v5012_v14  ;;  %v5015_v17 = vsel %vm3572_vm1, 4294967295, %v5014_v17  ;;  %2284 = vmatprep.subr.msk.mxu0 %vm3572_vm1, %v4763_v7  ;;  %vm3579_vm3 = vmand %vm759_vm2, %vm825_vm9  ;;  %v661_v32 = vadd.s32 152, %v2978_v2  ;;  %v693_v34 = vadd.s32 408, %v2978_v2  ;;  %v5020_v36 = vmov 0 }
  0x96   : > { %5016 = vst [vmem:[#allocation18_spill] sm:$0xff] %v5015_v17  ;;  %v5018_v19 = vsel %vm3579_vm3, 4294967295, %v5017_v19  ;;  %2319 = vmatprep.subr.msk.mxu1 %vm3579_vm3, %v4763_v7  ;;  %vm711_vm7 = vcmp.ge.s32.totalorder %v646_v22, %v2988_v16  ;;  %vm777_vm8 = vcmp.lt.s32.totalorder %v646_v22, %v2994_v21  ;;  %vm743_vm2 = vcmp.ge.s32.totalorder %v678_v24, %v2988_v16 }
  0x97   : > { %5019 = vst [vmem:[#allocation19_spill] sm:$0xff] %v5018_v19  ;;  %vm809_vm9 = vcmp.lt.s32.totalorder %v678_v24, %v2994_v21  ;;  %vm3594_vm10 = vmand %vm711_vm7, %vm777_vm8  ;;  %vm726_vm12 = vcmp.ge.s32.totalorder %v661_v32, %v2988_v16  ;;  %vm792_vm3 = vcmp.lt.s32.totalorder %v661_v32, %v2994_v21  ;;  %vm758_vm1 = vcmp.ge.s32.totalorder %v693_v34, %v2988_v16 }
  0x98   : > { %v5021_v36 = vsel %vm3594_vm10, 4294967295, %v5020_v36  ;;  %vm824_vm6 = vcmp.lt.s32.totalorder %v693_v34, %v2994_v21  ;;  %2285 = vmatpush3.msk.msra.mxu0 %vm3594_vm10, %v4763_v7  ;;  %vm3605_vm11 = vmand %vm743_vm2, %vm809_vm9  ;;  %v5023_v37 = vmov 0  ;;  %v645_v44 = vadd.s32 24, %v2978_v2 }
  0x99   : > { %5022 = vst [vmem:[#allocation20_spill] sm:$0xff] %v5021_v36  ;;  %v5024_v37 = vsel %vm3605_vm11, 4294967295, %v5023_v37  ;;  %v677_v47 = vadd.s32 280, %v2978_v2  ;;  %v660_v50 = vadd.s32 144, %v2978_v2  ;;  %v692_v51 = vadd.s32 400, %v2978_v2  ;;  %2320 = vmatpush3.msk.msra.mxu1 %vm3605_vm11, %v4763_v7  ;;  %vm3616_vm7 = vmand %vm726_vm12, %vm792_vm3 }
  0x9a   : > { %5025 = vst [vmem:[#allocation21_spill] sm:$0xff] %v5024_v37  ;;  %v5026_v63 = vmov 0  ;;  %v644_v4 = vadd.s32 16, %v2978_v2  ;;  %v676_v8 = vadd.s32 272, %v2978_v2  ;;  %v659_v10 = vadd.s32 136, %v2978_v2  ;;  %2286 = vmatprep.subr.msk.mxu0 %vm3616_vm7, %v4763_v7  ;;  %vm3629_vm8 = vmand %vm758_vm1, %vm824_vm6 }
  0x9b   : > { %v5027_v63 = vsel %vm3616_vm7, 4294967295, %v5026_v63  ;;  %v691_v22 = vadd.s32 392, %v2978_v2  ;;  %v5029_v24 = vmov 0  ;;  %vm710_vm3 = vcmp.ge.s32.totalorder %v645_v44, %v2988_v16  ;;  %2321 = vmatprep.subr.msk.mxu1 %vm3629_vm8, %v4763_v7 }
  0x9c   : > { %5028 = vst [vmem:[#allocation22_spill] sm:$0xff] %v5027_v63  ;;  %v5030_v24 = vsel %vm3629_vm8, 4294967295, %v5029_v24  ;;  %vm776_vm2 = vcmp.lt.s32.totalorder %v645_v44, %v2994_v21  ;;  %vm742_vm9 = vcmp.ge.s32.totalorder %v677_v47, %v2988_v16  ;;  %vm808_vm12 = vcmp.lt.s32.totalorder %v677_v47, %v2994_v21 }
  0x9d   : > { %5031 = vst [vmem:[#allocation23_spill] sm:$0xff] %v5030_v24  ;;  %vm3640_vm11 = vmand %vm710_vm3, %vm776_vm2  ;;  %v5032_v32 = vmov 0  ;;  %vm725_vm6 = vcmp.ge.s32.totalorder %v660_v50, %v2988_v16  ;;  %vm791_vm1 = vcmp.lt.s32.totalorder %v660_v50, %v2994_v21  ;;  %vm757_vm7 = vcmp.ge.s32.totalorder %v692_v51, %v2988_v16 }
  0x9e   : > { %v5033_v32 = vsel %vm3640_vm11, 4294967295, %v5032_v32  ;;  %vm823_vm10 = vcmp.lt.s32.totalorder %v692_v51, %v2994_v21  ;;  %2287 = vmatpush3.msk.msra.mxu0 %vm3640_vm11, %v4763_v7  ;;  %vm3651_vm4 = vmand %vm742_vm9, %vm808_vm12  ;;  %v5035_v34 = vmov 0  ;;  %vm709_vm3 = vcmp.ge.s32.totalorder %v644_v4, %v2988_v16 }
  0x9f   : > { %5034 = vst [vmem:[#allocation24_spill] sm:$0xff] %v5033_v32  ;;  %v5036_v34 = vsel %vm3651_vm4, 4294967295, %v5035_v34  ;;  %vm775_vm2 = vcmp.lt.s32.totalorder %v644_v4, %v2994_v21  ;;  %2322 = vmatpush3.msk.msra.mxu1 %vm3651_vm4, %v4763_v7  ;;  %vm3660_vm8 = vmand %vm725_vm6, %vm791_vm1  ;;  %v5038_v44 = vmov 0  ;;  %vm741_vm0 = vcmp.ge.s32.totalorder %v676_v8, %v2988_v16 }
  0xa0   : > { %5037 = vst [vmem:[#allocation25_spill] sm:$0xff] %v5036_v34  ;;  %v5039_v44 = vsel %vm3660_vm8, 4294967295, %v5038_v44  ;;  %vm807_vm11 = vcmp.lt.s32.totalorder %v676_v8, %v2994_v21  ;;  %vm724_vm9 = vcmp.ge.s32.totalorder %v659_v10, %v2988_v16  ;;  %2288 = vmatprep.subr.msk.mxu0 %vm3660_vm8, %v4763_v7  ;;  %vm3670_vm12 = vmand %vm757_vm7, %vm823_vm10  ;;  %v5041_v47 = vmov 0 }
  0xa1   : > { %5040 = vst [vmem:[#allocation26_spill] sm:$0xff] %v5039_v44  ;;  %v5042_v47 = vsel %vm3670_vm12, 4294967295, %v5041_v47  ;;  %vm790_vm4 = vcmp.lt.s32.totalorder %v659_v10, %v2994_v21  ;;  %v643_v50 = vadd.s32 8, %v2978_v2  ;;  %v675_v51 = vadd.s32 264, %v2978_v2  ;;  %2323 = vmatprep.subr.msk.mxu1 %vm3670_vm12, %v4763_v7  ;;  %vm3681_vm6 = vmand %vm709_vm3, %vm775_vm2 }
  0xa2   : > { %5043 = vst [vmem:[#allocation27_spill] sm:$0xff] %v5042_v47  ;;  %v658_v4 = vadd.s32 128, %v2978_v2  ;;  %v5044_v34 = vmov 0  ;;  %vm756_vm10 = vcmp.ge.s32.totalorder %v691_v22, %v2988_v16  ;;  %vm822_vm7 = vcmp.lt.s32.totalorder %v691_v22, %v2994_v21  ;;  %2289 = vmatpush3.msk.msra.mxu0 %vm3681_vm6, %v4763_v7  ;;  %vm3693_vm1 = vmand %vm741_vm0, %vm807_vm11 }
  0xa3   : > { %v5045_v34 = vsel %vm3681_vm6, 4294967295, %v5044_v34  ;;  %v690_v44 = vadd.s32 384, %v2978_v2  ;;  %v5047_v32 = vmov 0  ;;  %vm708_vm3 = vcmp.ge.s32.totalorder %v643_v50, %v2988_v16  ;;  %2324 = vmatpush3.msk.msra.mxu1 %vm3693_vm1, %v4763_v7  ;;  %vm3704_vm12 = vmand %vm724_vm9, %vm790_vm4 }
  0xa4   : > { %5046 = vst [vmem:[#allocation28_spill] sm:$0xff] %v5045_v34  ;;  %v5048_v32 = vsel %vm3693_vm1, 4294967295, %v5047_v32  ;;  %vm774_vm2 = vcmp.lt.s32.totalorder %v643_v50, %v2994_v21  ;;  %v5050_v22 = vmov 0  ;;  %vm740_vm6 = vcmp.ge.s32.totalorder %v675_v51, %v2988_v16  ;;  %2290 = vmatprep.subr.msk.mxu0 %vm3704_vm12, %v4763_v7  ;;  %vm3714_vm11 = vmand %vm756_vm10, %vm822_vm7 }
  0xa5   : > { %5049 = vst [vmem:[#allocation29_spill] sm:$0xff] %v5048_v32  ;;  %v5051_v22 = vsel %vm3704_vm12, 4294967295, %v5050_v22  ;;  %vm806_vm0 = vcmp.lt.s32.totalorder %v675_v51, %v2994_v21  ;;  %v674_v8 = vadd.s32 256, %v2978_v2  ;;  %v5053_v50 = vmov 0  ;;  %2325 = vmatprep.subr.msk.mxu1 %vm3714_vm11, %v4763_v7  ;;  %vm3723_vm9 = vmand %vm708_vm3, %vm774_vm2 }
  0xa6   : > { %5052 = vst [vmem:[#allocation30_spill] sm:$0xff] %v5051_v22  ;;  %v5054_v50 = vsel %vm3714_vm11, 4294967295, %v5053_v50  ;;  %vm723_vm1 = vcmp.ge.s32.totalorder %v658_v4, %v2988_v16  ;;  %vm789_vm4 = vcmp.lt.s32.totalorder %v658_v4, %v2994_v21  ;;  %v5056_v10 = vmov 0  ;;  %2291 = vmatpush3.msk.msra.mxu0 %vm3723_vm9, %v4763_v7  ;;  %vm3732_vm10 = vmand %vm740_vm6, %vm806_vm0 }
  0xa7   : > { %5055 = vst [vmem:[#allocation31_spill] sm:$0xff] %v5054_v50  ;;  %v5057_v10 = vsel %vm3723_vm9, 4294967295, %v5056_v10  ;;  %vm755_vm8 = vcmp.ge.s32.totalorder %v690_v44, %v2988_v16  ;;  %vm821_vm12 = vcmp.lt.s32.totalorder %v690_v44, %v2994_v21  ;;  %v5059_v51 = vmov 0  ;;  %2326 = vmatpush3.msk.msra.mxu1 %vm3732_vm10, %v4763_v7  ;;  %vm3743_vm2 = vmand %vm723_vm1, %vm789_vm4 }
  0xa8   : > { %5058 = vst [vmem:[#allocation32_spill] sm:$0xff] %v5057_v10  ;;  %v5060_v51 = vsel %vm3732_vm10, 4294967295, %v5059_v51  ;;  %vm707_vm7 = vcmp.ge.s32.totalorder %v2978_v2, %v2988_v16  ;;  %vm773_vm3 = vcmp.lt.s32.totalorder %v2978_v2, %v2994_v21  ;;  %v5062_v44 = vmov 0  ;;  %2292 = vmatprep.subr.msk.mxu0 %vm3743_vm2, %v4763_v7  ;;  %vm3752_vm0 = vmand %vm755_vm8, %vm821_vm12 }
  0xa9   : > { %5061 = vst [vmem:[#allocation33_spill] sm:$0xff] %v5060_v51  ;;  %v5063_v44 = vsel %vm3743_vm2, 4294967295, %v5062_v44  ;;  %vm739_vm9 = vcmp.ge.s32.totalorder %v674_v8, %v2988_v16  ;;  %vm805_vm6 = vcmp.lt.s32.totalorder %v674_v8, %v2994_v21  ;;  %v5065_v4 = vmov 0  ;;  %2327 = vmatprep.subr.msk.mxu1 %vm3752_vm0, %v4763_v7  ;;  %vm3759_vm1 = vmand %vm707_vm7, %vm773_vm3 }
  0xaa   : > { %5064 = vst [vmem:[#allocation34_spill] sm:$0xff] %v5063_v44  ;;  %v5066_v4 = vsel %vm3752_vm0, 4294967295, %v5065_v4  ;;  %v5068_v2 = vmov 0  ;;  %2293 = vmatpush3.msk.msra.mxu0 %vm3759_vm1, %v4763_v7  ;;  %vm3766_vm4 = vmand %vm739_vm9, %vm805_vm6  ;;  %v5071_v16 = vmov 0  ;;  %vm5074_vm8 = vnez %v4854_v33 }
  0xab   : > { %5067 = vst [vmem:[#allocation35_spill] sm:$0xff] %v5066_v4  ;;  %v5069_v2 = vsel %vm3759_vm1, 4294967295, %v5068_v2  ;;  %v5072_v16 = vsel %vm3766_vm4, 4294967295, %v5071_v16  ;;  %2328 = vmatpush3.msk.msra.mxu1 %vm3766_vm4, %v4763_v7  ;;  %2332 = vmatprep.subr.msk.mxu0 %vm5074_vm8, %v4763_v7  ;;  %vm5075_vm12 = vnez %v4857_v35  ;;  %vm5085_vm9 = vnez %v4860_v38 }
  0xac   : > { %5070 = vst [vmem:[#allocation36_spill] sm:$0xff] %v5069_v2  ;;  %5073 = vst [vmem:[#allocation37_spill] sm:$0xff] %v5072_v16  ;;  %2367 = vmatprep.subr.msk.mxu1 %vm5075_vm12, %v4763_v7  ;;  %vm5086_vm7 = vnez %v4862_v39  ;;  %vm5087_vm3 = vnez %v4865_v41  ;;  %vm5088_vm6 = vnez %v4867_v42  ;;  %vm5089_vm12 = vnez %v4871_v45 }
  0xad   : > { %vm5090_vm8 = vnez %v4875_v46 }
 0x131   : > { %v3779_v21 = vpop.f32.mrf.mxu0  ;;  %v3781_v8 = vpop.f32.mrf.mxu1 }
 0x132   : > { %5076 = vst [vmem:[#allocation38_spill] sm:$0xff] %v3779_v21  ;;  %5077 = vst [vmem:[#allocation39_spill] sm:$0xff] %v3781_v8  ;;  %v511_v2 = vrot.slane %v3779_v21, 4  ;;  %v523_v4 = vrot.slane %v3781_v8, 4 }
 0x133   : > { %v3785_v44 = vpop.f32.mrf.mxu0  ;;  %v3787_v16 = vpop.f32.mrf.mxu1 }
 0x134   : > { %5078 = vst [vmem:[#allocation40_spill] sm:$0xff] %v3785_v44  ;;  %5079 = vst [vmem:[#allocation41_spill] sm:$0xff] %v3787_v16  ;;  %v517_v51 = vrot.slane %v3785_v44, 4  ;;  %v529_v33 = vrot.slane %v3787_v16, 4  ;;  %v512_v10 = vadd.f32 %v511_v2, %v3779_v21  ;;  %v524_v7 = vadd.f32 %v523_v4, %v3781_v8 }
 0x135   : > { %v3793_v35 = vpop.f32.mrf.mxu0  ;;  %v3795_v50 = vpop.f32.mrf.mxu1 }
 0x136   : > { %5080 = vst [vmem:[#allocation42_spill] sm:$0xff] %v3793_v35  ;;  %5081 = vst [vmem:[#allocation43_spill] sm:$0xff] %v3795_v50  ;;  %v518_v22 = vadd.f32 %v517_v51, %v3785_v44  ;;  %v530_v32 = vadd.f32 %v529_v33, %v3787_v16  ;;  %v3801_v34 = vmul.f32 %v3793_v35, %v3779_v21  ;;  %v513_v47 = vrot.slane %v512_v10, 2 }
 0x137   : > { %v525_v24 = vrot.slane %v524_v7, 2  ;;  %v3805_v63 = vmul.f32 %v3795_v50, %v3781_v8  ;;  %v3807_v57 = vpop.f32.mrf.mxu0  ;;  %v3810_v8 = vpop.f32.mrf.mxu1 }
 0x138   : > { %5082 = vst [vmem:[#allocation44_spill] sm:$0xff] %v3801_v34  ;;  %v519_v2 = vrot.slane %v518_v22, 2  ;;  %v531_v4 = vrot.slane %v530_v32, 2  ;;  %v514_v37 = vadd.f32 %v513_v47, %v512_v10 }
 0x139   : > { %5083 = vst [vmem:[#allocation45_spill] sm:$0xff] %v3805_v63  ;;  %v526_v36 = vadd.f32 %v525_v24, %v524_v7  ;;  %v541_v63 = vrot.slane %v3807_v57, 4  ;;  %v553_v7 = vrot.slane %v3810_v8, 4  ;;  %v5084_v24 = vmov 1.0  }
 0x13a   : > { %v520_v19 = vadd.f32 %v519_v2, %v518_v22  ;;  %v532_v17 = vadd.f32 %v531_v4, %v530_v32  ;;  %v515_v14 = vrot.slane %v514_v37, 1 }
 0x13b   : > { %v527_v51 = vrot.slane %v526_v36, 1 }
 0x13c   : > { %v521_v12 = vrot.slane %v520_v19, 1  ;;  %v533_v33 = vrot.slane %v532_v17, 1  ;;  %v516_v21 = vadd.f32 %v515_v14, %v514_v37  ;;  %v560_v14 = vmul.f32 %v3785_v44, %v3785_v44  ;;  %v5132_v44 = vld [vmem:[#allocation20_spill] sm:$0xff] }
 0x13d   : > { %v528_v34 = vadd.f32 %v527_v51, %v526_v36  ;;  %v535_v36 = vrot.slane %v3793_v35, 4  ;;  %v547_v37 = vrot.slane %v3795_v50, 4 }
 0x13e   : > { %v522_v6 = vadd.f32 %v521_v12, %v520_v19  ;;  %v534_v60 = vadd.f32 %v533_v33, %v532_v17  ;;  %v562_v19 = vmul.f32 %v3787_v16, %v3787_v16  ;;  %v569_v32 = vrot.slane %v560_v14, 4 }
 0x13f   : > { %v536_v22 = vadd.f32 %v535_v36, %v3793_v35  ;;  %v548_v10 = vadd.f32 %v547_v37, %v3795_v50  ;;  %v5134_v50 = vld [vmem:[#allocation21_spill] sm:$0xff]  ;;  %v5144_v35 = vld [vmem:[#allocation26_spill] sm:$0xff] }
 0x140   : > { %1093 = vmatprep.mubr.f32.mxu0 %v522_v6  ;;  %1163 = vmatprep.mubr.f32.mxu1 %v534_v60  ;;  %v542_v60 = vadd.f32 %v541_v63, %v3807_v57  ;;  %v554_v6 = vadd.f32 %v553_v7, %v3810_v8  ;;  %v581_v47 = vrot.slane %v562_v19, 4  ;;  %v570_v2 = vadd.f32 %v569_v32, %v560_v14  ;;  %v5128_v32 = vld [vmem:[#allocation18_spill] sm:$0xff] }
 0x141   : > { %1094 = vmatmul.mubr.f32.vlgmr.msra.gmra.mxu0 %v516_v21  ;;  %1164 = vmatmul.mubr.f32.vlgmr.msra.gmra.mxu1 %v528_v34  ;;  %v537_v33 = vrot.slane %v536_v22, 2  ;;  %v549_v7 = vrot.slane %v548_v10, 2 }
 0x142   : > { %2333 = vmatpush3.msk.msra.mxu0 %vm5085_vm9, %v5084_v24  ;;  %2368 = vmatpush3.msk.msra.mxu1 %vm5086_vm7, %v5084_v24  ;;  %vm5091_vm7 = vnez %v4878_v48  ;;  %vm5098_vm9 = vnez %v4910_v62  ;;  %v543_v12 = vrot.slane %v542_v60, 2  ;;  %v555_v17 = vrot.slane %v554_v6, 2 }
 0x143   : > { %2334 = vmatprep.subr.msk.mxu0 %vm5087_vm3, %v5084_v24  ;;  %2369 = vmatprep.subr.msk.mxu1 %vm5088_vm6, %v5084_v24  ;;  %vm5092_vm3 = vnez %v4882_v49  ;;  %vm5093_vm6 = vnez %v4887_v53  ;;  %v582_v51 = vadd.f32 %v581_v47, %v562_v19  ;;  %v5126_v19 = vld [vmem:[#allocation17_spill] sm:$0xff]  ;;  %v571_v37 = vrot.slane %v570_v2, 2  ;;  %v5130_v47 = vld [vmem:[#allocation19_spill] sm:$0xff] }
 0x144   : > { %2335 = vmatpush3.msk.msra.mxu0 %vm5089_vm12, %v5084_v24  ;;  %2370 = vmatpush3.msk.msra.mxu1 %vm5090_vm8, %v5084_v24  ;;  %vm5094_vm12 = vnez %v4891_v54  ;;  %vm5095_vm8 = vnez %v4896_v58  ;;  %v544_v63 = vadd.f32 %v543_v12, %v542_v60  ;;  %v556_v34 = vadd.f32 %v555_v17, %v554_v6  ;;  %v5118_v60 = vld [vmem:[#allocation13_spill] sm:$0xff]  ;;  %v5120_v6 = vld [vmem:[#allocation14_spill] sm:$0xff]  ;;  %v5122_v12 = vld [vmem:[#allocation15_spill] sm:$0xff] }
 0x145   : > { %2336 = vmatprep.subr.msk.mxu0 %vm5091_vm7, %v5084_v24  ;;  %2371 = vmatprep.subr.msk.mxu1 %vm5092_vm3, %v5084_v24  ;;  %vm5096_vm7 = vnez %v4900_v59  ;;  %vm5097_vm3 = vnez %v4906_v61  ;;  %v5124_v17 = vld [vmem:[#allocation16_spill] sm:$0xff]  ;;  %v583_v16 = vrot.slane %v582_v51, 2 }
 0x146   : > { %2337 = vmatpush3.msk.msra.mxu0 %vm5093_vm6, %v5084_v24  ;;  %2372 = vmatpush3.msk.msra.mxu1 %vm5094_vm12, %v5084_v24  ;;  %vm5099_vm12 = vnez %v4914_v0  ;;  %v545_v21 = vrot.slane %v544_v63, 1  ;;  %v557_v4 = vrot.slane %v556_v34, 1 }
 0x147   : > { %2338 = vmatprep.subr.msk.mxu0 %vm5095_vm8, %v5084_v24  ;;  %2373 = vmatprep.subr.msk.mxu1 %vm5096_vm7, %v5084_v24  ;;  %vm5100_vm8 = vnez %v4918_v3 }
 0x148   : > { %2339 = vmatpush3.msk.msra.mxu0 %vm5097_vm3, %v5084_v24  ;;  %2374 = vmatpush3.msk.msra.mxu1 %vm5098_vm9, %v5084_v24  ;;  %vm5101_vm3 = vnez %v4922_v5  ;;  %v546_v14 = vadd.f32 %v545_v21, %v544_v63  ;;  %v558_v36 = vadd.f32 %v557_v4, %v556_v34  ;;  %v538_v63 = vadd.f32 %v537_v33, %v536_v22  ;;  %v5136_v34 = vld [vmem:[#allocation22_spill] sm:$0xff]  ;;  %v5138_v4 = vld [vmem:[#allocation23_spill] sm:$0xff]  ;;  %v5142_v33 = vld [vmem:[#allocation25_spill] sm:$0xff] }
 0x149   : > { %2340 = vmatprep.subr.msk.mxu0 %vm5099_vm12, %v5084_v24  ;;  %2375 = vmatprep.subr.msk.mxu1 %vm5100_vm8, %v5084_v24  ;;  %vm5102_vm12 = vnez %v4932_v9  ;;  %vm5103_vm8 = vnez %v4936_v11  ;;  %v550_v21 = vadd.f32 %v549_v7, %v548_v10  ;;  %v572_v22 = vadd.f32 %v571_v37, %v570_v2  ;;  %v5140_v10 = vld [vmem:[#allocation24_spill] sm:$0xff]  ;;  %v5150_v37 = vld [vmem:[#allocation29_spill] sm:$0xff] }
 0x14a   : > { %2341 = vmatpush3.msk.msra.mxu0 %vm5101_vm3, %v5084_v24  ;;  %2376 = vmatpush3.msk.msra.mxu1 %vm3238_vm14, %v5084_v24  ;;  %vm5104_vm3 = vnez %v4938_v13  ;;  %v584_v7 = vadd.f32 %v583_v16, %v582_v51  ;;  %v5148_v2 = vld [vmem:[#allocation28_spill] sm:$0xff]  ;;  %v5152_v16 = vld [vmem:[#allocation30_spill] sm:$0xff] }
 0x14b   : > { %2342 = vmatprep.subr.msk.mxu0 %vm5102_vm12, %v5084_v24  ;;  %2377 = vmatprep.subr.msk.mxu1 %vm5103_vm8, %v5084_v24  ;;  %vm5105_vm8 = vnez %v4961_v23 }
 0x14c   : > { %2343 = vmatpush3.msk.msra.mxu0 %vm5104_vm3, %v5084_v24  ;;  %2378 = vmatpush3.msk.msra.mxu1 %vm3302_vm15, %v5084_v24  ;;  %vm5106_vm3 = vnez %v4966_v25  ;;  %vm5107_vm15 = vnez %v4972_v26 }
 0x14d   : > { %2344 = vmatprep.subr.msk.mxu0 %vm4981_vm5, %v5084_v24  ;;  %2379 = vmatprep.subr.msk.mxu1 %vm4982_vm13, %v5084_v24  ;;  %vm5108_vm5 = vnez %v4976_v27  ;;  %vm5111_vm13 = vnez %v4984_v30 }
 0x14e   : > { %2345 = vmatpush3.msk.msra.mxu0 %vm5105_vm8, %v5084_v24  ;;  %2380 = vmatpush3.msk.msra.mxu1 %vm5106_vm3, %v5084_v24  ;;  %vm5109_vm8 = vnez %v4978_v28  ;;  %vm5110_vm3 = vnez %v4980_v29 }
 0x14f   : > { %2346 = vmatprep.subr.msk.mxu0 %vm5107_vm15, %v5084_v24  ;;  %2381 = vmatprep.subr.msk.mxu1 %vm5108_vm5, %v5084_v24  ;;  %vm5112_vm15 = vnez %v4988_v31  ;;  %vm5113_vm5 = vnez %v4990_v40 }
 0x150   : > { %2347 = vmatpush3.msk.msra.mxu0 %vm5109_vm8, %v5084_v24  ;;  %2382 = vmatpush3.msk.msra.mxu1 %vm5110_vm3, %v5084_v24  ;;  %vm5114_vm8 = vnez %v4992_v43  ;;  %vm5115_vm3 = vnez %v4994_v52 }
 0x151   : > { %2348 = vmatprep.subr.msk.mxu0 %vm5111_vm13, %v5084_v24  ;;  %2383 = vmatprep.subr.msk.mxu1 %vm5112_vm15, %v5084_v24  ;;  %vm5116_vm13 = vnez %v4996_v55  ;;  %vm5117_vm15 = vnez %v4998_v56 }
 0x152   : > { %2349 = vmatpush3.msk.msra.mxu0 %vm5113_vm5, %v5084_v24  ;;  %2384 = vmatpush3.msk.msra.mxu1 %vm5114_vm8, %v5084_v24  ;;  %vm5119_vm5 = vnez %v5118_v60  ;;  %vm5121_vm8 = vnez %v5120_v6 }
 0x153   : > { %2350 = vmatprep.subr.msk.mxu0 %vm5115_vm3, %v5084_v24  ;;  %2385 = vmatprep.subr.msk.mxu1 %vm5116_vm13, %v5084_v24  ;;  %vm5123_vm3 = vnez %v5122_v12  ;;  %vm5125_vm13 = vnez %v5124_v17 }
 0x154   : > { %2351 = vmatpush3.msk.msra.mxu0 %vm5117_vm15, %v5084_v24  ;;  %2386 = vmatpush3.msk.msra.mxu1 %vm5119_vm5, %v5084_v24  ;;  %vm5127_vm15 = vnez %v5126_v19  ;;  %vm5129_vm5 = vnez %v5128_v32 }
 0x155   : > { %2352 = vmatprep.subr.msk.mxu0 %vm5121_vm8, %v5084_v24  ;;  %2387 = vmatprep.subr.msk.mxu1 %vm5123_vm3, %v5084_v24  ;;  %vm5131_vm8 = vnez %v5130_v47  ;;  %vm5137_vm3 = vnez %v5136_v34  ;;  %v5160_v34 = vld [vmem:[#allocation36_spill] sm:$0xff] }
 0x156   : > { %2353 = vmatpush3.msk.msra.mxu0 %vm5125_vm13, %v5084_v24  ;;  %2388 = vmatpush3.msk.msra.mxu1 %vm5127_vm15, %v5084_v24  ;;  %vm5133_vm13 = vnez %v5132_v44  ;;  %vm5135_vm15 = vnez %v5134_v50 }
 0x157   : > { %2354 = vmatprep.subr.msk.mxu0 %vm5129_vm5, %v5084_v24  ;;  %2389 = vmatprep.subr.msk.mxu1 %vm5131_vm8, %v5084_v24  ;;  %vm5139_vm5 = vnez %v5138_v4  ;;  %vm5141_vm8 = vnez %v5140_v10  ;;  %v539_v4 = vrot.slane %v538_v63, 1 }
 0x158   : > { %2355 = vmatpush3.msk.msra.mxu0 %vm5133_vm13, %v5084_v24  ;;  %2390 = vmatpush3.msk.msra.mxu1 %vm5135_vm15, %v5084_v24  ;;  %vm5143_vm13 = vnez %v5142_v33  ;;  %vm5145_vm15 = vnez %v5144_v35  ;;  %v5155_v35 = vld [vmem:[#allocation32_spill] sm:$0xff]  ;;  %v585_v33 = vrot.slane %v584_v7, 1 }
 0x159   : > { %2356 = vmatprep.subr.msk.mxu0 %vm5137_vm3, %v5084_v24  ;;  %1233 = vmatprep.mubr.f32.mxu0 %v546_v14  ;;  %v5146_v14 = vld [vmem:[#allocation27_spill] sm:$0xff]  ;;  %v540_v51 = vadd.f32 %v539_v4, %v538_v63 }
 0x15a   : > { %2391 = vmatprep.subr.msk.mxu1 %vm5139_vm5, %v5084_v24  ;;  %1303 = vmatprep.mubr.f32.mxu1 %v558_v36  ;;  %vm5147_vm3 = vnez %v5146_v14  ;;  %v551_v36 = vrot.slane %v550_v21, 1  ;;  %vm5149_vm5 = vnez %v5148_v2  ;;  %v573_v14 = vrot.slane %v572_v22, 1 }
 0x15b   : > { %2357 = vmatpush3.msk.msra.mxu0 %vm5141_vm8, %v5084_v24  ;;  %2392 = vmatpush3.msk.msra.mxu1 %vm5143_vm13, %v5084_v24  ;;  %vm5151_vm8 = vnez %v5150_v37  ;;  %vm5153_vm13 = vnez %v5152_v16  ;;  %v5162_v37 = vld [vmem:[#allocation11_spill] sm:$0xff]  ;;  %v5164_v16 = vld [vmem:[#allocation12_spill] sm:$0xff]  ;;  %v586_v63 = vadd.f32 %v585_v33, %v584_v7  ;;  %v588_v33 = vmul.f32 %v3807_v57, %v3807_v57 }
 0x15c   : > { %2358 = vmatprep.subr.msk.mxu0 %vm5145_vm15, %v5084_v24  ;;  %2393 = vmatprep.subr.msk.mxu1 %vm5147_vm3, %v5084_v24  ;;  %vm5156_vm3 = vnez %v5155_v35  ;;  %v552_v10 = vadd.f32 %v551_v36, %v550_v21  ;;  %v5161_v35 = vld [vmem:[#allocation37_spill] sm:$0xff]  ;;  %v574_v2 = vadd.f32 %v573_v14, %v572_v22  ;;  %v5175_v21 = vld [vmem:[#allocation38_spill] sm:$0xff]  ;;  %v5176_v22 = vld [vmem:[#allocation39_spill] sm:$0xff]  ;;  %v590_v7 = vmul.f32 %v3810_v8, %v3810_v8 }
 0x15d   : > { %2359 = vmatpush3.msk.msra.mxu0 %vm5149_vm5, %v5084_v24  ;;  %2394 = vmatpush3.msk.msra.mxu1 %vm5151_vm8, %v5084_v24  ;;  %v559_v4 = vmul.f32 %v5175_v21, %v5175_v21 }
 0x15e   : > { %2360 = vmatprep.subr.msk.mxu0 %vm5153_vm13, %v5084_v24  ;;  %2395 = vmatprep.subr.msk.mxu1 %vm3714_vm11, %v5084_v24 }
 0x15f   : > { %2361 = vmatpush3.msk.msra.mxu0 %vm5156_vm3, %v5084_v24  ;;  %2396 = vmatpush3.msk.msra.mxu1 %vm3732_vm10, %v5084_v24  ;;  %vm5166_vm10 = vnez %v4860_v38  ;;  %vm5173_vm3 = vnez %v4882_v49  ;;  %v563_v14 = vrot.slane %v559_v4, 4 }
 0x160   : > { %2362 = vmatprep.subr.msk.mxu0 %vm3743_vm2, %v5084_v24  ;;  %2397 = vmatprep.subr.msk.mxu1 %vm3752_vm0, %v5084_v24  ;;  %vm5163_vm2 = vnez %v5162_v37  ;;  %vm5165_vm0 = vnez %v5164_v16 }
 0x161   : > { %2363 = vmatpush3.msk.msra.mxu0 %vm3759_vm1, %v5084_v24  ;;  %2398 = vmatpush3.msk.msra.mxu1 %vm3766_vm4, %v5084_v24  ;;  %vm5167_vm4 = vnez %v4862_v39  ;;  %vm5168_vm1 = vnez %v4865_v41 }
 0x162   : > { %1234 = vmatmul.mubr.f32.vlgmr.msra.gmra.mxu0 %v540_v51  ;;  %1304 = vmatmul.mubr.f32.vlgmr.msra.gmra.mxu1 %v552_v10  ;;  %v561_v10 = vmul.f32 %v5176_v22, %v5176_v22  ;;  %v609_v51 = vrot.slane %v590_v7, 4 }
 0x163   : > { %2402 = vmatprep.subr.msk.mxu0 %vm5163_vm2, %v5084_v24  ;;  %2437 = vmatprep.subr.msk.mxu1 %vm5165_vm0, %v5084_v24  ;;  %vm5169_vm2 = vnez %v4867_v42  ;;  %vm5170_vm0 = vnez %v4871_v45 }
 0x164   : > { %2403 = vmatpush3.msk.msra.mxu0 %vm5166_vm10, %v5084_v24  ;;  %1373 = vmatprep.mubr.f32.mxu0 %v574_v2  ;;  %vm5171_vm10 = vnez %v4875_v46  ;;  %v575_v36 = vrot.slane %v561_v10, 4  ;;  %v597_v2 = vrot.slane %v588_v33, 4 }
 0x165   : > { %2438 = vmatpush3.msk.msra.mxu1 %vm5167_vm4, %v5084_v24  ;;  %1443 = vmatprep.mubr.f32.mxu1 %v586_v63  ;;  %vm5172_vm4 = vnez %v4878_v48  ;;  %v564_v63 = vadd.f32 %v563_v14, %v559_v4  ;;  %v610_v4 = vadd.f32 %v609_v51, %v590_v7  ;;  %v5209_v51 = vld [vmem:[#allocation22_spill] sm:$0xff] }
 0x166   : > { %2404 = vmatprep.subr.msk.mxu0 %vm5168_vm1, %v5084_v24  ;;  %2439 = vmatprep.subr.msk.mxu1 %vm5169_vm2, %v5084_v24  ;;  %vm5174_vm2 = vnez %v4891_v54  ;;  %v576_v21 = vadd.f32 %v575_v36, %v561_v10  ;;  %v598_v22 = vadd.f32 %v597_v2, %v588_v33 }
 0x167   : > { %2405 = vmatpush3.msk.msra.mxu0 %vm5170_vm0, %v5084_v24  ;;  %2440 = vmatpush3.msk.msra.mxu1 %vm5171_vm10, %v5084_v24  ;;  %v565_v10 = vrot.slane %v564_v63, 2  ;;  %v611_v7 = vrot.slane %v610_v4, 2 }
 0x168   : > { %2406 = vmatprep.subr.msk.mxu0 %vm5172_vm4, %v5084_v24  ;;  %2441 = vmatprep.subr.msk.mxu1 %vm5173_vm3, %v5084_v24  ;;  %vm5177_vm4 = vnez %v4896_v58  ;;  %v577_v14 = vrot.slane %v576_v21, 2  ;;  %v599_v33 = vrot.slane %v598_v22, 2 }
 0x169   : > { %2407 = vmatpush3.msk.msra.mxu0 %vm5093_vm6, %v5084_v24  ;;  %2442 = vmatpush3.msk.msra.mxu1 %vm5174_vm2, %v5084_v24  ;;  %vm5178_vm6 = vnez %v4906_v61  ;;  %vm5179_vm2 = vnez %v4914_v0  ;;  %v566_v36 = vadd.f32 %v565_v10, %v564_v63  ;;  %v5213_v63 = vld [vmem:[#allocation24_spill] sm:$0xff]  ;;  %v612_v10 = vadd.f32 %v611_v7, %v610_v4  ;;  %v5230_v4 = vld [vmem:[#allocation35_spill] sm:$0xff] }
 0x16a   : > { %2408 = vmatprep.subr.msk.mxu0 %vm5177_vm4, %v5084_v24  ;;  %2443 = vmatprep.subr.msk.mxu1 %vm5096_vm7, %v5084_v24  ;;  %vm5180_vm4 = vnez %v4918_v3  ;;  %v578_v2 = vadd.f32 %v577_v14, %v576_v21  ;;  %v5215_v21 = vld [vmem:[#allocation25_spill] sm:$0xff]  ;;  %v5224_v14 = vld [vmem:[#allocation32_spill] sm:$0xff] }
 0x16b   : > { %2409 = vmatpush3.msk.msra.mxu0 %vm5178_vm6, %v5084_v24  ;;  %2444 = vmatpush3.msk.msra.mxu1 %vm5098_vm9, %v5084_v24  ;;  %vm5181_vm6 = vnez %v4922_v5  ;;  %vm5202_vm9 = vnez %v5122_v12 }
 0x16c   : > { %2410 = vmatprep.subr.msk.mxu0 %vm5179_vm2, %v5084_v24  ;;  %2445 = vmatprep.subr.msk.mxu1 %vm5180_vm4, %v5084_v24  ;;  %vm5182_vm4 = vnez %v4936_v11  ;;  %vm5183_vm2 = vnez %v4938_v13 }
 0x16d   : > { %2411 = vmatpush3.msk.msra.mxu0 %vm5181_vm6, %v5084_v24  ;;  %2446 = vmatpush3.msk.msra.mxu1 %vm3238_vm14, %v5084_v24  ;;  %vm5184_vm6 = vnez %v4944_v15  ;;  %vm5185_vm14 = vnez %v4950_v18 }
 0x16e   : > { %2412 = vmatprep.subr.msk.mxu0 %vm5102_vm12, %v5084_v24  ;;  %2447 = vmatprep.subr.msk.mxu1 %vm5182_vm4, %v5084_v24  ;;  %vm5186_vm12 = vnez %v4956_v20  ;;  %vm5187_vm4 = vnez %v4961_v23 }
 0x16f   : > { %2413 = vmatpush3.msk.msra.mxu0 %vm5183_vm2, %v5084_v24  ;;  %2448 = vmatpush3.msk.msra.mxu1 %vm5184_vm6, %v5084_v24  ;;  %vm5188_vm2 = vnez %v4966_v25  ;;  %vm5189_vm6 = vnez %v4972_v26 }
 0x170   : > { %2414 = vmatprep.subr.msk.mxu0 %vm5185_vm14, %v5084_v24  ;;  %2449 = vmatprep.subr.msk.mxu1 %vm5186_vm12, %v5084_v24  ;;  %vm5190_vm14 = vnez %v4976_v27  ;;  %vm5191_vm12 = vnez %v4978_v28 }
 0x171   : > { %2415 = vmatpush3.msk.msra.mxu0 %vm5187_vm4, %v5084_v24  ;;  %2450 = vmatpush3.msk.msra.mxu1 %vm5188_vm2, %v5084_v24  ;;  %vm5192_vm4 = vnez %v4980_v29  ;;  %vm5193_vm2 = vnez %v4984_v30 }
 0x172   : > { %2416 = vmatprep.subr.msk.mxu0 %vm5189_vm6, %v5084_v24  ;;  %2451 = vmatprep.subr.msk.mxu1 %vm5190_vm14, %v5084_v24  ;;  %vm5194_vm6 = vnez %v4988_v31  ;;  %vm5195_vm14 = vnez %v4990_v40 }
 0x173   : > { %2417 = vmatpush3.msk.msra.mxu0 %vm5191_vm12, %v5084_v24  ;;  %2452 = vmatpush3.msk.msra.mxu1 %vm5192_vm4, %v5084_v24  ;;  %vm5196_vm12 = vnez %v4992_v43  ;;  %vm5197_vm4 = vnez %v4994_v52 }
 0x174   : > { %2418 = vmatprep.subr.msk.mxu0 %vm5193_vm2, %v5084_v24  ;;  %2453 = vmatprep.subr.msk.mxu1 %vm5194_vm6, %v5084_v24  ;;  %vm5198_vm2 = vnez %v4996_v55  ;;  %vm5199_vm6 = vnez %v4998_v56 }
 0x175   : > { %2419 = vmatpush3.msk.msra.mxu0 %vm5195_vm14, %v5084_v24  ;;  %2454 = vmatpush3.msk.msra.mxu1 %vm5196_vm12, %v5084_v24  ;;  %vm5200_vm14 = vnez %v5118_v60  ;;  %vm5201_vm12 = vnez %v5120_v6 }
 0x176   : > { %2420 = vmatprep.subr.msk.mxu0 %vm5197_vm4, %v5084_v24  ;;  %2455 = vmatprep.subr.msk.mxu1 %vm5198_vm2, %v5084_v24  ;;  %vm5203_vm2 = vnez %v5124_v17 }
 0x177   : > { %2421 = vmatpush3.msk.msra.mxu0 %vm5199_vm6, %v5084_v24  ;;  %2456 = vmatpush3.msk.msra.mxu1 %vm5200_vm14, %v5084_v24  ;;  %vm5204_vm6 = vnez %v5126_v19  ;;  %vm5205_vm14 = vnez %v5128_v32  ;;  %v5211_v32 = vld [vmem:[#allocation23_spill] sm:$0xff] }
 0x178   : > { %2422 = vmatprep.subr.msk.mxu0 %vm5201_vm12, %v5084_v24  ;;  %2457 = vmatprep.subr.msk.mxu1 %vm5202_vm9, %v5084_v24  ;;  %vm5206_vm12 = vnez %v5130_v47  ;;  %vm5207_vm9 = vnez %v5132_v44  ;;  %v600_v47 = vadd.f32 %v599_v33, %v598_v22  ;;  %v5226_v22 = vld [vmem:[#allocation33_spill] sm:$0xff]  ;;  %v5228_v33 = vld [vmem:[#allocation34_spill] sm:$0xff] }
 0x179   : > { %2423 = vmatpush3.msk.msra.mxu0 %vm5203_vm2, %v5084_v24  ;;  %2458 = vmatpush3.msk.msra.mxu1 %vm5204_vm6, %v5084_v24  ;;  %vm5208_vm2 = vnez %v5134_v50  ;;  %vm5210_vm6 = vnez %v5209_v51  ;;  %v5218_v51 = vld [vmem:[#allocation27_spill] sm:$0xff]  ;;  %v579_v50 = vrot.slane %v578_v2, 1 }
 0x17a   : > { %2424 = vmatprep.subr.msk.mxu0 %vm5205_vm14, %v5084_v24  ;;  %2459 = vmatprep.subr.msk.mxu1 %vm5206_vm12, %v5084_v24  ;;  %vm5212_vm14 = vnez %v5211_v32  ;;  %vm5214_vm12 = vnez %v5213_v63  ;;  %v567_v32 = vrot.slane %v566_v36, 1 }
 0x17b   : > { %2425 = vmatpush3.msk.msra.mxu0 %vm5207_vm9, %v5084_v24  ;;  %2460 = vmatpush3.msk.msra.mxu1 %vm5208_vm2, %v5084_v24  ;;  %vm5216_vm9 = vnez %v5215_v21  ;;  %v613_v21 = vrot.slane %v612_v10, 1  ;;  %v580_v63 = vadd.f32 %v579_v50, %v578_v2 }
 0x17c   : > { %2426 = vmatprep.subr.msk.mxu0 %vm5210_vm6, %v5084_v24  ;;  %2461 = vmatprep.subr.msk.mxu1 %vm5212_vm14, %v5084_v24  ;;  %vm5219_vm6 = vnez %v5218_v51  ;;  %v601_v51 = vrot.slane %v600_v47, 1  ;;  %v568_v7 = vadd.f32 %v567_v32, %v566_v36  ;;  %v5242_v32 = vld [vmem:[#allocation42_spill] sm:$0xff]  ;;  %v5243_v36 = vld [vmem:[#allocation43_spill] sm:$0xff] }
 0x17d   : > { %2427 = vmatpush3.msk.msra.mxu0 %vm5214_vm12, %v5084_v24  ;;  %2462 = vmatpush3.msk.msra.mxu1 %vm5216_vm9, %v5084_v24  ;;  %v614_v50 = vadd.f32 %v613_v21, %v612_v10  ;;  %v589_v2 = vmul.f32 %v5243_v36, %v5243_v36  ;;  %v5250_v21 = vld [vmem:[#allocation41_spill] sm:$0xff] }
 0x17e   : > { %2428 = vmatprep.subr.msk.mxu0 %vm5145_vm15, %v5084_v24  ;;  %2463 = vmatprep.subr.msk.mxu1 %vm5219_vm6, %v5084_v24  ;;  %vm5225_vm6 = vnez %v5224_v14  ;;  %v618_v10 = vmul.f32 %v3810_v8, %v5250_v21 }
 0x17f   : > { %2429 = vmatpush3.msk.msra.mxu0 %vm5149_vm5, %v5084_v24  ;;  %2464 = vmatpush3.msk.msra.mxu1 %vm5151_vm8, %v5084_v24  ;;  %vm5227_vm5 = vnez %v5226_v22  ;;  %vm5229_vm8 = vnez %v5228_v33  ;;  %v602_v22 = vadd.f32 %v601_v51, %v600_v47  ;;  %v587_v47 = vmul.f32 %v5242_v32, %v5242_v32  ;;  %v5247_v51 = vld [vmem:[#allocation40_spill] sm:$0xff] }
 0x180   : > { %2430 = vmatprep.subr.msk.mxu0 %vm5153_vm13, %v5084_v24  ;;  %2465 = vmatprep.subr.msk.mxu1 %vm3714_vm11, %v5084_v24  ;;  %vm5231_vm13 = vnez %v5230_v4  ;;  %vm5232_vm11 = vnez %v5160_v34 }
 0x181   : > { %2431 = vmatpush3.msk.msra.mxu0 %vm5225_vm6, %v5084_v24  ;;  %2466 = vmatpush3.msk.msra.mxu1 %vm5227_vm5, %v5084_v24  ;;  %vm5233_vm6 = vnez %v5161_v35  ;;  %vm5236_vm5 = vnez %v4860_v38  ;;  %v5320_v38 = vld [vmem:[#allocation44_spill] sm:$0xff] }
 0x182   : > { %2432 = vmatprep.subr.msk.mxu0 %vm5229_vm8, %v5084_v24  ;;  %2467 = vmatprep.subr.msk.mxu1 %vm5231_vm13, %v5084_v24  ;;  %vm5234_vm8 = vnez %v5162_v37  ;;  %vm5235_vm13 = vnez %v5164_v16 }
 0x183   : > { %2433 = vmatpush3.msk.msra.mxu0 %vm5232_vm11, %v5084_v24  ;;  %2468 = vmatpush3.msk.msra.mxu1 %vm5233_vm6, %v5084_v24  ;;  %vm5237_vm6 = vnez %v4862_v39 }
 0x184   : > { %1374 = vmatmul.mubr.f32.vlgmr.msra.gmra.mxu0 %v568_v7  ;;  %1444 = vmatmul.mubr.f32.vlgmr.msra.gmra.mxu1 %v580_v63  ;;  %v616_v63 = vmul.f32 %v3807_v57, %v5247_v51  ;;  %v591_v57 = vrot.slane %v587_v47, 4  ;;  %v637_v7 = vrot.slane %v618_v10, 4 }
 0x185   : > { %2472 = vmatprep.subr.msk.mxu0 %vm5234_vm8, %v5084_v24  ;;  %2507 = vmatprep.subr.msk.mxu1 %vm5235_vm13, %v5084_v24  ;;  %vm5238_vm8 = vnez %v4867_v42 }
 0x186   : > { %2473 = vmatpush3.msk.msra.mxu0 %vm5236_vm5, %v5084_v24  ;;  %1513 = vmatprep.mubr.f32.mxu0 %v602_v22  ;;  %v603_v22 = vrot.slane %v589_v2, 4  ;;  %v625_v8 = vrot.slane %v616_v63, 4 }
 0x187   : > { %2508 = vmatpush3.msk.msra.mxu1 %vm5237_vm6, %v5084_v24  ;;  %1583 = vmatprep.mubr.f32.mxu1 %v614_v50  ;;  %vm5239_vm6 = vnez %v4878_v48  ;;  %v592_v50 = vadd.f32 %v591_v57, %v587_v47  ;;  %v638_v47 = vadd.f32 %v637_v7, %v618_v10  ;;  %v5276_v10 = vld [vmem:[#allocation18_spill] sm:$0xff]  ;;  %v5278_v57 = vld [vmem:[#allocation19_spill] sm:$0xff] }
 0x188   : > { %2474 = vmatprep.subr.msk.mxu0 %vm5168_vm1, %v5084_v24  ;;  %2509 = vmatprep.subr.msk.mxu1 %vm5238_vm8, %v5084_v24  ;;  %vm5240_vm1 = vnez %v4887_v53  ;;  %vm5241_vm8 = vnez %v4891_v54  ;;  %v604_v32 = vadd.f32 %v603_v22, %v589_v2  ;;  %v626_v36 = vadd.f32 %v625_v8, %v616_v63 }
 0x189   : > { %2475 = vmatpush3.msk.msra.mxu0 %vm5170_vm0, %v5084_v24  ;;  %2510 = vmatpush3.msk.msra.mxu1 %vm5171_vm10, %v5084_v24  ;;  %v593_v2 = vrot.slane %v592_v50, 2  ;;  %v639_v21 = vrot.slane %v638_v47, 2 }
 0x18a   : > { %2476 = vmatprep.subr.msk.mxu0 %vm5239_vm6, %v5084_v24  ;;  %2511 = vmatprep.subr.msk.mxu1 %vm5173_vm3, %v5084_v24  ;;  %vm5244_vm6 = vnez %v4896_v58  ;;  %vm5248_vm3 = vnez %v4914_v0  ;;  %v605_v51 = vrot.slane %v604_v32, 2  ;;  %v627_v63 = vrot.slane %v626_v36, 2 }
 0x18b   : > { %2477 = vmatpush3.msk.msra.mxu0 %vm5240_vm1, %v5084_v24  ;;  %2512 = vmatpush3.msk.msra.mxu1 %vm5241_vm8, %v5084_v24  ;;  %vm5245_vm1 = vnez %v4906_v61  ;;  %vm5246_vm8 = vnez %v4910_v62  ;;  %v594_v22 = vadd.f32 %v593_v2, %v592_v50  ;;  %v5285_v50 = vld [vmem:[#allocation24_spill] sm:$0xff]  ;;  %v640_v2 = vadd.f32 %v639_v21, %v638_v47  ;;  %v5294_v47 = vld [vmem:[#allocation30_spill] sm:$0xff]  ;;  %v5296_v21 = vld [vmem:[#allocation31_spill] sm:$0xff] }
 0x18c   : > { %2478 = vmatprep.subr.msk.mxu0 %vm5244_vm6, %v5084_v24  ;;  %2513 = vmatprep.subr.msk.mxu1 %vm5096_vm7, %v5084_v24  ;;  %vm5249_vm6 = vnez %v4918_v3  ;;  %vm5255_vm7 = vnez %v4938_v13  ;;  %v606_v8 = vadd.f32 %v605_v51, %v604_v32  ;;  %v5286_v32 = vld [vmem:[#allocation25_spill] sm:$0xff] }
 0x18d   : > { %2479 = vmatpush3.msk.msra.mxu0 %vm5245_vm1, %v5084_v24  ;;  %2514 = vmatpush3.msk.msra.mxu1 %vm5246_vm8, %v5084_v24  ;;  %vm5251_vm1 = vnez %v4922_v5  ;;  %vm5252_vm8 = vnez %v4926_v1  ;;  %v641_v51 = vrot.slane %v640_v2, 1 }
 0x18e   : > { %2480 = vmatprep.subr.msk.mxu0 %vm5248_vm3, %v5084_v24  ;;  %2515 = vmatprep.subr.msk.mxu1 %vm5249_vm6, %v5084_v24  ;;  %vm5253_vm3 = vnez %v4932_v9  ;;  %vm5254_vm6 = vnez %v4936_v11  ;;  %v607_v7 = vrot.slane %v606_v8, 1 }
 0x18f   : > { %2481 = vmatpush3.msk.msra.mxu0 %vm5251_vm1, %v5084_v24  ;;  %2516 = vmatpush3.msk.msra.mxu1 %vm5252_vm8, %v5084_v24  ;;  %vm5256_vm1 = vnez %v4944_v15  ;;  %vm5257_vm8 = vnez %v4950_v18 }
 0x190   : > { %2482 = vmatprep.subr.msk.mxu0 %vm5253_vm3, %v5084_v24  ;;  %2517 = vmatprep.subr.msk.mxu1 %vm5254_vm6, %v5084_v24  ;;  %vm5258_vm3 = vnez %v4956_v20  ;;  %vm5259_vm6 = vnez %v4961_v23 }
 0x191   : > { %2483 = vmatpush3.msk.msra.mxu0 %vm5255_vm7, %v5084_v24  ;;  %2518 = vmatpush3.msk.msra.mxu1 %vm5256_vm1, %v5084_v24  ;;  %vm5260_vm7 = vnez %v4966_v25  ;;  %vm5261_vm1 = vnez %v4972_v26 }
 0x192   : > { %2484 = vmatprep.subr.msk.mxu0 %vm5257_vm8, %v5084_v24  ;;  %2519 = vmatprep.subr.msk.mxu1 %vm5258_vm3, %v5084_v24  ;;  %vm5262_vm8 = vnez %v4976_v27  ;;  %vm5263_vm3 = vnez %v4978_v28 }
 0x193   : > { %2485 = vmatpush3.msk.msra.mxu0 %vm5259_vm6, %v5084_v24  ;;  %2520 = vmatpush3.msk.msra.mxu1 %vm5260_vm7, %v5084_v24  ;;  %vm5264_vm6 = vnez %v4980_v29  ;;  %vm5265_vm7 = vnez %v4984_v30 }
 0x194   : > { %2486 = vmatprep.subr.msk.mxu0 %vm5261_vm1, %v5084_v24  ;;  %2521 = vmatprep.subr.msk.mxu1 %vm5262_vm8, %v5084_v24  ;;  %vm5266_vm1 = vnez %v4988_v31  ;;  %vm5267_vm8 = vnez %v4990_v40 }
 0x195   : > { %2487 = vmatpush3.msk.msra.mxu0 %vm5263_vm3, %v5084_v24  ;;  %2522 = vmatpush3.msk.msra.mxu1 %vm5264_vm6, %v5084_v24  ;;  %vm5268_vm3 = vnez %v4992_v43  ;;  %vm5273_vm6 = vnez %v5122_v12 }
 0x196   : > { %2488 = vmatprep.subr.msk.mxu0 %vm5265_vm7, %v5084_v24  ;;  %2523 = vmatprep.subr.msk.mxu1 %vm5266_vm1, %v5084_v24  ;;  %vm5269_vm7 = vnez %v4996_v55  ;;  %vm5270_vm1 = vnez %v4998_v56 }
 0x197   : > { %2489 = vmatpush3.msk.msra.mxu0 %vm5267_vm8, %v5084_v24  ;;  %2524 = vmatpush3.msk.msra.mxu1 %vm5268_vm3, %v5084_v24  ;;  %vm5271_vm8 = vnez %v5118_v60  ;;  %vm5272_vm3 = vnez %v5120_v6 }
 0x198   : > { %2490 = vmatprep.subr.msk.mxu0 %vm5197_vm4, %v5084_v24  ;;  %2525 = vmatprep.subr.msk.mxu1 %vm5269_vm7, %v5084_v24  ;;  %vm5274_vm7 = vnez %v5124_v17 }
 0x199   : > { %2491 = vmatpush3.msk.msra.mxu0 %vm5270_vm1, %v5084_v24  ;;  %2526 = vmatpush3.msk.msra.mxu1 %vm5271_vm8, %v5084_v24  ;;  %vm5275_vm1 = vnez %v5126_v19  ;;  %vm5277_vm8 = vnez %v5276_v10  ;;  %v5282_v19 = vld [vmem:[#allocation22_spill] sm:$0xff]  ;;  %v595_v10 = vrot.slane %v594_v22, 1 }
 0x19a   : > { %2492 = vmatprep.subr.msk.mxu0 %vm5272_vm3, %v5084_v24  ;;  %2527 = vmatprep.subr.msk.mxu1 %vm5273_vm6, %v5084_v24  ;;  %vm5279_vm3 = vnez %v5278_v57  ;;  %vm5280_vm6 = vnez %v5132_v44  ;;  %v628_v57 = vadd.f32 %v627_v63, %v626_v36  ;;  %v5290_v36 = vld [vmem:[#allocation28_spill] sm:$0xff]  ;;  %v5292_v63 = vld [vmem:[#allocation29_spill] sm:$0xff] }
 0x19b   : > { %2493 = vmatpush3.msk.msra.mxu0 %vm5274_vm7, %v5084_v24  ;;  %2528 = vmatpush3.msk.msra.mxu1 %vm5275_vm1, %v5084_v24  ;;  %vm5283_vm1 = vnez %v5282_v19  ;;  %v5288_v19 = vld [vmem:[#allocation27_spill] sm:$0xff] }
 0x19c   : > { %2494 = vmatprep.subr.msk.mxu0 %vm5277_vm8, %v5084_v24  ;;  %2529 = vmatprep.subr.msk.mxu1 %vm5279_vm3, %v5084_v24 }
 0x19d   : > { %2495 = vmatpush3.msk.msra.mxu0 %vm5280_vm6, %v5084_v24  ;;  %2530 = vmatpush3.msk.msra.mxu1 %vm5208_vm2, %v5084_v24 }
 0x19e   : > { %2496 = vmatprep.subr.msk.mxu0 %vm5283_vm1, %v5084_v24  ;;  %2531 = vmatprep.subr.msk.mxu1 %vm5212_vm14, %v5084_v24  ;;  %vm5289_vm1 = vnez %v5288_v19  ;;  %vm5291_vm14 = vnez %v5290_v36  ;;  %v629_v19 = vrot.slane %v628_v57, 1  ;;  %v5299_v36 = vld [vmem:[#allocation33_spill] sm:$0xff] }
 0x19f   : > { %2497 = vmatpush3.msk.msra.mxu0 %vm5214_vm12, %v5084_v24  ;;  %2532 = vmatpush3.msk.msra.mxu1 %vm5216_vm9, %v5084_v24  ;;  %vm5293_vm12 = vnez %v5292_v63  ;;  %vm5295_vm9 = vnez %v5294_v47  ;;  %v608_v47 = vadd.f32 %v607_v7, %v606_v8 }
 0x1a0   : > { %2498 = vmatprep.subr.msk.mxu0 %vm5145_vm15, %v5084_v24  ;;  %2533 = vmatprep.subr.msk.mxu1 %vm5289_vm1, %v5084_v24  ;;  %vm5297_vm15 = vnez %v5296_v21  ;;  %vm5298_vm1 = vnez %v5224_v14  ;;  %v596_v21 = vadd.f32 %v595_v10, %v594_v22  ;;  %v642_v10 = vadd.f32 %v641_v51, %v640_v2 }
 0x1a1   : > { %2499 = vmatpush3.msk.msra.mxu0 %vm5291_vm14, %v5084_v24  ;;  %2534 = vmatpush3.msk.msra.mxu1 %vm5293_vm12, %v5084_v24  ;;  %vm5300_vm14 = vnez %v5299_v36  ;;  %vm5301_vm12 = vnez %v5228_v33  ;;  %v630_v36 = vadd.f32 %v629_v19, %v628_v57 }
 0x1a2   : > { %2500 = vmatprep.subr.msk.mxu0 %vm5295_vm9, %v5084_v24  ;;  %2535 = vmatprep.subr.msk.mxu1 %vm5297_vm15, %v5084_v24  ;;  %vm5302_vm9 = vnez %v5230_v4 }
 0x1a3   : > { %2501 = vmatpush3.msk.msra.mxu0 %vm5298_vm1, %v5084_v24  ;;  %2536 = vmatpush3.msk.msra.mxu1 %vm5300_vm14, %v5084_v24  ;;  %vm5303_vm1 = vnez %v5161_v35 }
 0x1a4   : > { %2502 = vmatprep.subr.msk.mxu0 %vm5301_vm12, %v5084_v24  ;;  %2537 = vmatprep.subr.msk.mxu1 %vm5302_vm9, %v5084_v24  ;;  %vm5304_vm12 = vnez %v5162_v37 }
 0x1a5   : > { %2503 = vmatpush3.msk.msra.mxu0 %vm5232_vm11, %v5084_v24  ;;  %2538 = vmatpush3.msk.msra.mxu1 %vm5303_vm1, %v5084_v24  ;;  %vm5305_vm1 = vnez %v4862_v39  ;;  %vm5306_vm11 = vnez %v4865_v41  ;;  %v619_v39 = vrot.slane %v5320_v38, 4  ;;  %v5321_v41 = vld [vmem:[#allocation45_spill] sm:$0xff] }
 0x1a6   : > { %1514 = vmatmul.mubr.f32.vlgmr.msra.gmra.mxu0 %v596_v21  ;;  %1584 = vmatmul.mubr.f32.vlgmr.msra.gmra.mxu1 %v608_v47 }
 0x1a7   : > { %2542 = vmatprep.subr.msk.mxu0 %vm5304_vm12, %v5084_v24  ;;  %2577 = vmatprep.subr.msk.mxu1 %vm5235_vm13, %v5084_v24  ;;  %vm5307_vm12 = vnez %v4867_v42  ;;  %vm5309_vm13 = vnez %v4882_v49  ;;  %v631_v42 = vrot.slane %v5321_v41, 4  ;;  %v620_v45 = vadd.f32 %v619_v39, %v5320_v38 }
 0x1a8   : > { %2543 = vmatpush3.msk.msra.mxu0 %vm5236_vm5, %v5084_v24  ;;  %1653 = vmatprep.mubr.f32.mxu0 %v630_v36  ;;  %vm5308_vm5 = vnez %v4878_v48 }
 0x1a9   : > { %2578 = vmatpush3.msk.msra.mxu1 %vm5305_vm1, %v5084_v24  ;;  %1723 = vmatprep.mubr.f32.mxu1 %v642_v10  ;;  %vm5311_vm1 = vnez %v4891_v54  ;;  %v632_v46 = vadd.f32 %v631_v42, %v5321_v41  ;;  %v621_v48 = vrot.slane %v620_v45, 2 }
 0x1aa   : > { %2544 = vmatprep.subr.msk.mxu0 %vm5306_vm11, %v5084_v24  ;;  %2579 = vmatprep.subr.msk.mxu1 %vm5307_vm12, %v5084_v24  ;;  %vm5310_vm11 = vnez %v4887_v53  ;;  %vm5314_vm12 = vnez %v4906_v61  ;;  %v5343_v53 = vld [vmem:[#allocation17_spill] sm:$0xff] }
 0x1ab   : > { %2545 = vmatpush3.msk.msra.mxu0 %vm5170_vm0, %v5084_v24  ;;  %2580 = vmatpush3.msk.msra.mxu1 %vm5171_vm10, %v5084_v24  ;;  %vm5312_vm0 = vnez %v4896_v58  ;;  %vm5313_vm10 = vnez %v4900_v59  ;;  %v633_v49 = vrot.slane %v632_v46, 2  ;;  %v622_v59 = vadd.f32 %v621_v48, %v620_v45 }
 0x1ac   : > { %2546 = vmatprep.subr.msk.mxu0 %vm5308_vm5, %v5084_v24  ;;  %2581 = vmatprep.subr.msk.mxu1 %vm5309_vm13, %v5084_v24  ;;  %vm5315_vm5 = vnez %v4910_v62  ;;  %vm5316_vm13 = vnez %v4914_v0  ;;  %v5348_v0 = vld [vmem:[#allocation22_spill] sm:$0xff] }
 0x1ad   : > { %2547 = vmatpush3.msk.msra.mxu0 %vm5310_vm11, %v5084_v24  ;;  %2582 = vmatpush3.msk.msra.mxu1 %vm5311_vm1, %v5084_v24  ;;  %vm5317_vm11 = vnez %v4918_v3  ;;  %vm5318_vm1 = vnez %v4922_v5  ;;  %v634_v61 = vadd.f32 %v633_v49, %v632_v46  ;;  %v5350_v3 = vld [vmem:[#allocation23_spill] sm:$0xff]  ;;  %v5354_v5 = vld [vmem:[#allocation26_spill] sm:$0xff] }
 0x1ae   : > { %2548 = vmatprep.subr.msk.mxu0 %vm5312_vm0, %v5084_v24  ;;  %2583 = vmatprep.subr.msk.mxu1 %vm5313_vm10, %v5084_v24  ;;  %vm5319_vm0 = vnez %v4926_v1  ;;  %vm5322_vm10 = vnez %v4932_v9  ;;  %v5356_v1 = vld [vmem:[#allocation27_spill] sm:$0xff]  ;;  %v623_v9 = vrot.slane %v622_v59, 1 }
 0x1af   : > { %2549 = vmatpush3.msk.msra.mxu0 %vm5314_vm12, %v5084_v24  ;;  %2584 = vmatpush3.msk.msra.mxu1 %vm5315_vm5, %v5084_v24  ;;  %vm5323_vm12 = vnez %v4936_v11  ;;  %vm5324_vm5 = vnez %v4938_v13  ;;  %v635_v11 = vrot.slane %v634_v61, 1  ;;  %v5358_v13 = vld [vmem:[#allocation28_spill] sm:$0xff] }
 0x1b0   : > { %2550 = vmatprep.subr.msk.mxu0 %vm5316_vm13, %v5084_v24  ;;  %2585 = vmatprep.subr.msk.mxu1 %vm5317_vm11, %v5084_v24  ;;  %vm5325_vm13 = vnez %v4944_v15  ;;  %vm5326_vm11 = vnez %v4950_v18  ;;  %v5361_v15 = vld [vmem:[#allocation30_spill] sm:$0xff] }
 0x1b1   : > { %2551 = vmatpush3.msk.msra.mxu0 %vm5318_vm1, %v5084_v24  ;;  %2586 = vmatpush3.msk.msra.mxu1 %vm5319_vm0, %v5084_v24  ;;  %vm5327_vm1 = vnez %v4956_v20  ;;  %vm5328_vm0 = vnez %v4961_v23  ;;  %v624_v23 = vadd.f32 %v623_v9, %v622_v59 }
 0x1b2   : > { %2552 = vmatprep.subr.msk.mxu0 %vm5322_vm10, %v5084_v24  ;;  %2587 = vmatprep.subr.msk.mxu1 %vm5323_vm12, %v5084_v24  ;;  %vm5329_vm10 = vnez %v4966_v25  ;;  %vm5330_vm12 = vnez %v4972_v26  ;;  %v636_v25 = vadd.f32 %v635_v11, %v634_v61 }
 0x1b3   : > { %2553 = vmatpush3.msk.msra.mxu0 %vm5324_vm5, %v5084_v24  ;;  %2588 = vmatpush3.msk.msra.mxu1 %vm5325_vm13, %v5084_v24  ;;  %vm5331_vm5 = vnez %v4976_v27  ;;  %vm5332_vm13 = vnez %v4978_v28 }
 0x1b4   : > { %2554 = vmatprep.subr.msk.mxu0 %vm5326_vm11, %v5084_v24  ;;  %2589 = vmatprep.subr.msk.mxu1 %vm5327_vm1, %v5084_v24  ;;  %vm5333_vm11 = vnez %v4980_v29  ;;  %vm5334_vm1 = vnez %v4984_v30 }
 0x1b5   : > { %2555 = vmatpush3.msk.msra.mxu0 %vm5328_vm0, %v5084_v24  ;;  %2590 = vmatpush3.msk.msra.mxu1 %vm5329_vm10, %v5084_v24  ;;  %vm5335_vm0 = vnez %v4988_v31  ;;  %vm5336_vm10 = vnez %v4990_v40 }
 0x1b6   : > { %2556 = vmatprep.subr.msk.mxu0 %vm5330_vm12, %v5084_v24  ;;  %2591 = vmatprep.subr.msk.mxu1 %vm5331_vm5, %v5084_v24  ;;  %vm5337_vm12 = vnez %v4992_v43  ;;  %vm5338_vm5 = vnez %v4996_v55 }
 0x1b7   : > { %2557 = vmatpush3.msk.msra.mxu0 %vm5332_vm13, %v5084_v24  ;;  %2592 = vmatpush3.msk.msra.mxu1 %vm5333_vm11, %v5084_v24  ;;  %vm5339_vm13 = vnez %v4998_v56  ;;  %vm5340_vm11 = vnez %v5118_v60 }
 0x1b8   : > { %2558 = vmatprep.subr.msk.mxu0 %vm5334_vm1, %v5084_v24  ;;  %2593 = vmatprep.subr.msk.mxu1 %vm5335_vm0, %v5084_v24  ;;  %vm5341_vm1 = vnez %v5120_v6  ;;  %vm5342_vm0 = vnez %v5122_v12 }
 0x1b9   : > { %2559 = vmatpush3.msk.msra.mxu0 %vm5336_vm10, %v5084_v24  ;;  %2594 = vmatpush3.msk.msra.mxu1 %vm5337_vm12, %v5084_v24  ;;  %vm5353_vm10 = vnez %v5286_v32  ;;  %vm5359_vm12 = vnez %v5358_v13 }
 0x1ba   : > { %2560 = vmatprep.subr.msk.mxu0 %vm5197_vm4, %v5084_v24  ;;  %2595 = vmatprep.subr.msk.mxu1 %vm5338_vm5, %v5084_v24  ;;  %vm5344_vm4 = vnez %v5343_v53  ;;  %vm5360_vm5 = vnez %v5292_v63 }
 0x1bb   : > { %2561 = vmatpush3.msk.msra.mxu0 %vm5339_vm13, %v5084_v24  ;;  %2596 = vmatpush3.msk.msra.mxu1 %vm5340_vm11, %v5084_v24  ;;  %vm5362_vm13 = vnez %v5361_v15  ;;  %vm5364_vm11 = vnez %v5224_v14 }
 0x1bc   : > { %2562 = vmatprep.subr.msk.mxu0 %vm5341_vm1, %v5084_v24  ;;  %2597 = vmatprep.subr.msk.mxu1 %vm5342_vm0, %v5084_v24  ;;  %vm5366_vm1 = vnez %v5228_v33  ;;  %vm5368_vm0 = vnez %v5161_v35 }
 0x1bd   : > { %2563 = vmatpush3.msk.msra.mxu0 %vm5274_vm7, %v5084_v24  ;;  %2598 = vmatpush3.msk.msra.mxu1 %vm5344_vm4, %v5084_v24  ;;  %vm5349_vm7 = vnez %v5348_v0 }
 0x1be   : > { %2564 = vmatprep.subr.msk.mxu0 %vm5277_vm8, %v5084_v24  ;;  %2599 = vmatprep.subr.msk.mxu1 %vm5279_vm3, %v5084_v24  ;;  %vm5351_vm8 = vnez %v5350_v3  ;;  %vm5352_vm3 = vnez %v5285_v50 }
 0x1bf   : > { %2565 = vmatpush3.msk.msra.mxu0 %vm5280_vm6, %v5084_v24  ;;  %2600 = vmatpush3.msk.msra.mxu1 %vm5208_vm2, %v5084_v24  ;;  %vm5355_vm6 = vnez %v5354_v5  ;;  %vm5357_vm2 = vnez %v5356_v1 }
 0x1c0   : > { %2566 = vmatprep.subr.msk.mxu0 %vm5349_vm7, %v5084_v24  ;;  %2601 = vmatprep.subr.msk.mxu1 %vm5351_vm8, %v5084_v24 }
 0x1c1   : > { %2567 = vmatpush3.msk.msra.mxu0 %vm5352_vm3, %v5084_v24  ;;  %2602 = vmatpush3.msk.msra.mxu1 %vm5353_vm10, %v5084_v24 }
 0x1c2   : > { %2568 = vmatprep.subr.msk.mxu0 %vm5355_vm6, %v5084_v24  ;;  %2603 = vmatprep.subr.msk.mxu1 %vm5357_vm2, %v5084_v24 }
 0x1c3   : > { %2569 = vmatpush3.msk.msra.mxu0 %vm5359_vm12, %v5084_v24  ;;  %2604 = vmatpush3.msk.msra.mxu1 %vm5360_vm5, %v5084_v24 }
 0x1c4   : > { %2570 = vmatprep.subr.msk.mxu0 %vm5362_vm13, %v5084_v24  ;;  %2605 = vmatprep.subr.msk.mxu1 %vm5297_vm15, %v5084_v24  ;;  %vm5367_vm15 = vnez %v5160_v34 }
 0x1c5   : > { %2571 = vmatpush3.msk.msra.mxu0 %vm5364_vm11, %v5084_v24  ;;  %2606 = vmatpush3.msk.msra.mxu1 %vm5300_vm14, %v5084_v24  ;;  %vm1751_vm14 = vcmask 24576  }
 0x1c6   : > { %2572 = vmatprep.subr.msk.mxu0 %vm5366_vm1, %v5084_v24  ;;  %2607 = vmatprep.subr.msk.mxu1 %vm5302_vm9, %v5084_v24 }
 0x1c7   : > { %2573 = vmatpush3.msk.msra.mxu0 %vm5367_vm15, %v5084_v24  ;;  %2608 = vmatpush3.msk.msra.mxu1 %vm5368_vm0, %v5084_v24 }
 0x1c8   : > { %1654 = vmatmul.mubr.f32.vlgmr.msra.gmra.mxu0 %v624_v23  ;;  %1724 = vmatmul.mubr.f32.vlgmr.msra.gmra.mxu1 %v636_v25 }
 0x201   : > { %v2294_v26 = vpop.f32.mrf.mxu0  ;;  %v2329_v27 = vpop.f32.mrf.mxu1 }
 0x203   : > { %v2295_v28 = vpop.f32.mrf.mxu0  ;;  %v2330_v29 = vpop.f32.mrf.mxu1 }
 0x204   : > { %v2296_v35 = vadd.f32 %v2295_v28, %v2294_v26  ;;  %v2331_v24 = vadd.f32 %v2330_v29, %v2329_v27 }
 0x206   : > { %v1166_v16 = vadd.f32 %v2331_v24, %v2296_v35 }
 0x208   : > { %v1730_v8 = vmul.f32 0.0009765625, %v1166_v16 }
 0x20a   : > { %v1732_v2 = vmul.f32 %v1730_v8, %v1166_v16 }
 0x222   : > { %v2364_v30 = vpop.f32.mrf.mxu0  ;;  %v2399_v31 = vpop.f32.mrf.mxu1 }
 0x224   : > { %v2365_v40 = vpop.f32.mrf.mxu0  ;;  %v2400_v43 = vpop.f32.mrf.mxu1 }
 0x225   : > { %v2366_v12 = vadd.f32 %v2365_v40, %v2364_v30  ;;  %v2401_v17 = vadd.f32 %v2400_v43, %v2399_v31 }
 0x227   : > { %v1306_v37 = vadd.f32 %v2401_v17, %v2366_v12 }
 0x229   : > { %v1731_v4 = vmul.f32 0.0009765625, %v1306_v37 }
 0x22b   : > { %v1734_v50 = vmul.f32 %v1731_v4, %v1306_v37  ;;  %v1744_v47 = vsub.f32 %v1730_v8, %v1731_v4  ;;  %v1736_v54 = vmul.f32 %v1731_v4, %v1166_v16 }
 0x22d   : > { %v1745_v38 = vmul.f32 %v1744_v47, %v1744_v47 }
 0x244   : > { %v2434_v52 = vpop.f32.mrf.mxu0  ;;  %v2469_v55 = vpop.f32.mrf.mxu1 }
 0x246   : > { %v2435_v56 = vpop.f32.mrf.mxu0  ;;  %v2470_v44 = vpop.f32.mrf.mxu1 }
 0x247   : > { %v2436_v57 = vadd.f32 %v2435_v56, %v2434_v52  ;;  %v2471_v22 = vadd.f32 %v2470_v44, %v2469_v55 }
 0x249   : > { %v1446_v32 = vadd.f32 %v2471_v22, %v2436_v57 }
 0x24b   : > { %v1733_v36 = vsub.f32 %v1446_v32, %v1732_v2 }
 0x24d   : > { %v1739_v21 = vmul.f32 0.0009775171, %v1733_v36 }
 0x266   : > { %v2504_v60 = vpop.f32.mrf.mxu0  ;;  %v2539_v6 = vpop.f32.mrf.mxu1 }
 0x268   : > { %v2505_v19 = vpop.f32.mrf.mxu0  ;;  %v2540_v34 = vpop.f32.mrf.mxu1 }
 0x269   : > { %v2506_v14 = vadd.f32 %v2505_v19, %v2504_v60  ;;  %v2541_v33 = vadd.f32 %v2540_v34, %v2539_v6 }
 0x26b   : > { %v1586_v7 = vadd.f32 %v2541_v33, %v2506_v14 }
 0x26d   : > { %v1735_v51 = vsub.f32 %v1586_v7, %v1734_v50 }
 0x26f   : > { %v1740_v63 = vmul.f32 0.0009775171, %v1735_v51 }
 0x271   : > { %v1743_v10 = vadd.f32 %v1740_v63, %v1739_v21 }
 0x273   : > { %v1746_v39 = vadd.f32 %v1745_v38, %v1743_v10 }
 0x275   : > { %2667 = vrcp.f32 %v1746_v39 }
 0x282   : > { %v2668_v62 = vpop.eup %2667 }
 0x288   : > { %v2574_v41 = vpop.f32.mrf.mxu0  ;;  %v2609_v42 = vpop.f32.mrf.mxu1 }
 0x28a   : > { %v2575_v45 = vpop.f32.mrf.mxu0  ;;  %v2610_v46 = vpop.f32.mrf.mxu1 }
 0x28b   : > { %v2576_v48 = vadd.f32 %v2575_v45, %v2574_v41  ;;  %v2611_v49 = vadd.f32 %v2610_v46, %v2609_v42 }
 0x28d   : > { %v1726_v53 = vadd.f32 %v2611_v49, %v2576_v48 }
 0x28f   : > { %v1737_v58 = vsub.f32 %v1726_v53, %v1736_v54 }
 0x291   : > { %v1741_v59 = vmul.f32 0.0009765625, %v1737_v58 }
 0x293   : > { %v1742_v61 = vmul.f32 2.0, %v1741_v59 }
 0x295   : > { %v1748_v0 = vmul.f32 %v2668_v62, %v1742_v61 }
 0x297   : > { %v1749_v3 = vsub.f32 1.0, %v1748_v0 }
 0x299   : > { %v1750_v5 = vmul.f32 0.5, %v1749_v3 }
 0x29b   : > { %1752 = vst.msk [vmem:[%s196_s29] sm:$0x1] %vm1751_vm14, %v1750_v5 }
 0x29c   : > { %2738 = shalt.err (!%p2735_p5)
}
 0x29d   : > { %s2739_s23 = scalar_lea.hbm %s1764_s16, 16  ;;  %s2743_s5 = scalar_lea.hbm %s4643_s2, 32 }
 0x29e   : > { %p2740_p9 = scmp.ne.s32.totalorder %s1764_s16, %s2739_s23  ;;  %p2744_p12 = scmp.lt.s32.totalorder %s1764_s16, %s4643_s2 }
 0x29f   : > { %p2745_p1 = scmp.lt.s32.totalorder %s2743_s5, %s2739_s23 }
 0x2a0   : > { %p2741_p0 = pnand %p2740_p9, %p5369_p13 }
 0x2a1   : > { %p2746_p3 = por %p2745_p1, %p2744_p12 }
 0x2a2   : > { %p2742_p11 = pneg %p2741_p0 }
 0x2a4   : > { %p2747_p6 = pnand %p2746_p3, %p2742_p11 }
 0x2a6   : > { %2750 = shalt.err (!%p2747_p6)
}
 0x2a7   : > { %2616 = dma.vmem_to_hbm [thread:$0]  (%p5369_p13), %s1767_s14, 16, %s1764_s16, %s1754_s17  }
 0x2a8 PF: > { %s1778_s30 = sand.u32 1, %s2781_s9   ;;  %p5370_p7 = scmp.ne.s32.totalorder %s4846_s22, 0 }
 0x2a9   : > { %p5371_p8 = scmp.ge.s32.totalorder %s2793_s12, 2  ;;  %s1779_s3 = scalar_lea.sflag [#allocation4], %s1778_s30 }
 0x2ab   : > { %p2626_p10 = pnand %p5371_p8, %p5370_p7 }
 0x2ad   : > { %p2627_p2 = pneg %p2626_p10 }
 0x2af   : > { %2776 = dma.done.wait (%p2627_p2), %s1779_s3, 16  }
 0x2b0   : > { %2778 = vsyncadd (%p2627_p2), %s1779_s3, 4294967280  ;;  %p18_p4 = scmp.ge.s32.totalorder %s2840_s15, 4   ;;  %s5372_s9 = smov %s2785_s10 }
 0x2b1   : > { %s5373_s10 = smov %s2789_s11  ;;  %s5374_s11 = smov %s2852_s18 }
 0x2b2   : > { %s5375_s12 = smov %s2840_s15  ;;  %20 = sbr.rel (!%p18_p4) target bundleno = 7 (0x7), region = 86 }
 0x2b7   :  { %1783 = vsyncpa [#allocation3], 1 }
 0x2b8   :  { %1785 = vsyncpa [#allocation3 + $0x1], 1 }
 0x2b9   :  { %1786 = vsyncpa [#allocation6], 1 }
 0x2ba   :  { %1788 = vsyncpa [#allocation6 + $0x1], 1 }
 0x2bb   :  { %1789 = vsyncpa [#allocation4], 1 }
 0x2bc   :  { %1791 = vsyncpa [#allocation4 + $0x1], 1 }

</bundles_post_ra>
